<compile_context>
chip_gen: v6e
topology: v6e:2x2x1
jax: 0.10.0
libtpu: 0.0.40
codegen_flags: <defaults>
</compile_context>

<pallas_src>
import jax
import jax.numpy as jnp
from jax import lax
from jax.experimental import pallas as pl
from jax.experimental.pallas import tpu as pltpu


def _round_up(x, m):
    return ((x + m - 1) // m) * m


def _make_rnn_kernel(num_layers, seq_len):
    def kernel(x_ref, *refs):
        # refs = [wih_0, whh_0, b_0, ..., wih_{L-1}, whh_{L-1}, b_{L-1},
        #         w_fc, b_fc, out_ref, seq_scratch]
        out_ref = refs[-2]
        seq_ref = refs[-1]
        wfc_ref = refs[3 * num_layers]
        bfc_ref = refs[3 * num_layers + 1]

        bt = x_ref.shape[1]                # batch tile (x is time-major)
        hidden = refs[1].shape[0]          # whh_0 is [H, H]

        h_last = None
        for l in range(num_layers):        # static Python loop over layers
            wih = refs[3 * l][...]
            whh = refs[3 * l + 1][...]
            b = refs[3 * l + 2][...]

            # Hoisted input projection: one big matmul over ALL timesteps
            # (no sequential dependence), leaving only the HxH recurrence
            # matmul inside the serial time loop.
            if l == 0:
                inp = x_ref[...].astype(jnp.float32).reshape(seq_len * bt, -1)
            else:
                inp = seq_ref[...].reshape(seq_len * bt, hidden)
            pre = jnp.dot(inp, wih, preferred_element_type=jnp.float32) + b
            seq_ref[...] = pre.reshape(seq_len, bt, hidden)

            is_last = (l == num_layers - 1)

            def step(t, h, whh=whh, write_back=not is_last):
                h_new = jnp.tanh(
                    seq_ref[t]
                    + jnp.dot(h, whh, preferred_element_type=jnp.float32))
                if write_back:
                    # h_t overwrites pre_t in place; it is only consumed by the
                    # next layer's (already-hoisted) input projection.
                    seq_ref[t] = h_new
                return h_new

            h_last = lax.fori_loop(0, seq_len, step,
                                   jnp.zeros((bt, hidden), jnp.float32),
                                   unroll=True)

        # TODO(synk): nn.RNN inter-layer dropout is identity in eval mode;
        # training-mode dropout is not implemented.
        out = (jnp.dot(h_last, wfc_ref[...], preferred_element_type=jnp.float32)
               + bfc_ref[...])
        out_ref[...] = out.astype(out_ref.dtype)

    return kernel


def rnn_model_forward(x, rnn_params, fc_params, *, batch_tile=128):
    """x: [B, T, D_in]; rnn_params: list of (W_ih[in,H], W_hh[H,H], b[1,H]);
    fc_params: (W_fc[H, D_out], b_fc[1, D_out]). Returns [B, D_out]."""
    B, T, D_in = x.shape
    num_layers = len(rnn_params)
    hidden = rnn_params[0][1].shape[0]
    W_fc, b_fc = fc_params
    D_out = W_fc.shape[1]

    # Large tiles amortize per-grid-step overhead and fill the MXU M dim;
    # clamp for tiny batches (still a single grid step, 8-aligned sublanes).
    bt = min(batch_tile, _round_up(B, 8))
    B_pad = _round_up(B, bt)

    # Time-major + batch padding (padded rows are discarded after the call).
    x_tm = jnp.transpose(x, (1, 0, 2))
    if B_pad != B:
        x_tm = jnp.pad(x_tm, ((0, 0), (0, B_pad - B), (0, 0)))

    flat = []
    in_specs = [pl.BlockSpec((T, bt, D_in), lambda i: (0, i, 0))]
    for (wih, whh, b) in rnn_params:
        for arr in (wih, whh, b):
            in_specs.append(pl.BlockSpec(arr.shape, lambda i: (0, 0)))
            flat.append(arr)
    for arr in (W_fc, b_fc):
        in_specs.append(pl.BlockSpec(arr.shape, lambda i: (0, 0)))
        flat.append(arr)

    out_specs = pl.BlockSpec((bt, D_out), lambda i: (i, 0))

    out = pl.pallas_call(
        _make_rnn_kernel(num_layers, T),
        out_shape=jax.ShapeDtypeStruct((B_pad, D_out), x.dtype),
        grid_spec=pltpu.PrefetchScalarGridSpec(
            num_scalar_prefetch=0,
            grid=(B_pad // bt,),
            in_specs=in_specs,
            out_specs=out_specs,
            scratch_shapes=[pltpu.VMEM((T, bt, hidden), jnp.float32)],
        ),
        compiler_params=pltpu.CompilerParams(
            dimension_semantics=("parallel",)),
    )(x_tm, *flat)
    return out[:B]


def init_params(key, input_dim, hidden_dim, layer_dim, output_dim):
    """PyTorch-style uniform(-1/sqrt(H), 1/sqrt(H)) init; weights pre-transposed
    to [in, out] and the two RNN biases folded into one [1, H] row per layer."""
    rnn_params = []
    bound = 1.0 / float(jnp.sqrt(hidden_dim))
    for l in range(layer_dim):
        in_dim = input_dim if l == 0 else hidden_dim
        key, k1, k2, k3, k4 = jax.random.split(key, 5)
        w_ih = jax.random.uniform(k1, (in_dim, hidden_dim), jnp.float32, -bound, bound)
        w_hh = jax.random.uniform(k2, (hidden_dim, hidden_dim), jnp.float32, -bound, bound)
        b_ih = jax.random.uniform(k3, (1, hidden_dim), jnp.float32, -bound, bound)
        b_hh = jax.random.uniform(k4, (1, hidden_dim), jnp.float32, -bound, bound)
        rnn_params.append((w_ih, w_hh, b_ih + b_hh))
    key, k5, k6 = jax.random.split(key, 3)
    w_fc = jax.random.uniform(k5, (hidden_dim, output_dim), jnp.float32, -bound, bound)
    b_fc = jax.random.uniform(k6, (1, output_dim), jnp.float32, -bound, bound)
    return rnn_params, (w_fc, b_fc)


def reference_forward(x, rnn_params, fc_params):
    B, T, _ = x.shape
    H = rnn_params[0][1].shape[0]
    L = len(rnn_params)
    hs = [jnp.zeros((B, H), jnp.float32) for _ in range(L)]
    for t in range(T):
        inp = x[:, t, :]
        for l, (wih, whh, b) in enumerate(rnn_params):
            hs[l] = jnp.tanh(inp @ wih + hs[l] @ whh + b)
            inp = hs[l]
    W_fc, b_fc = fc_params
    return hs[-1] @ W_fc + b_fc


if __name__ == "__main__":
    key = jax.random.PRNGKey(0)
    key, kx = jax.random.split(key)

    batch, seq_len = 16, 8
    input_dim, hidden_dim, layer_dim, output_dim = 16, 32, 2, 4
    # dropout_prob only affects training; identity at inference.

    x = jax.random.normal(kx, (batch, seq_len, input_dim), jnp.float32)
    rnn_params, fc_params = init_params(key, input_dim, hidden_dim,
                                        layer_dim, output_dim)

    out = rnn_model_forward(x, rnn_params, fc_params, batch_tile=128)
    out = jax.block_until_ready(out)

    ref = reference_forward(x, rnn_params, fc_params)
    assert out.shape == (batch, output_dim)
    assert jnp.allclose(out, ref, atol=2e-3, rtol=2e-3), "mismatch vs reference"

    print("KERNEL_OK")
</pallas_src>

<mosaic_0001>
module attributes {stable_mosaic.version = 11 : i64} {
  func.func @kernel(%arg0: i32, %arg1: memref<8x16x16xf32, #tpu.memory_space<vmem>>, %arg2: memref<16x32xf32, #tpu.memory_space<vmem>>, %arg3: memref<32x32xf32, #tpu.memory_space<vmem>>, %arg4: memref<1x32xf32, #tpu.memory_space<vmem>>, %arg5: memref<32x32xf32, #tpu.memory_space<vmem>>, %arg6: memref<32x32xf32, #tpu.memory_space<vmem>>, %arg7: memref<1x32xf32, #tpu.memory_space<vmem>>, %arg8: memref<32x4xf32, #tpu.memory_space<vmem>>, %arg9: memref<1x4xf32, #tpu.memory_space<vmem>>, %arg10: memref<16x4xf32, #tpu.memory_space<vmem>>, %arg11: memref<8x16x32xf32, #tpu.memory_space<vmem>>) attributes {dimension_semantics = [#tpu.dimension_semantics<parallel>], iteration_bounds = array<i64: 1>, scalar_prefetch = 0 : i64, scratch_operands = 1 : i64, tpu.core_type = #tpu.core_type<tc>, window_params = [{transform_indices = @transform_0, window_bounds = array<i64: 8, 16, 16>}, {pipeline_mode = #tpu.pipeline_mode<synchronous>, transform_indices = @transform_1, window_bounds = array<i64: 16, 32>}, {pipeline_mode = #tpu.pipeline_mode<synchronous>, transform_indices = @transform_2, window_bounds = array<i64: 32, 32>}, {pipeline_mode = #tpu.pipeline_mode<synchronous>, transform_indices = @transform_3, window_bounds = array<i64: 1, 32>}, {pipeline_mode = #tpu.pipeline_mode<synchronous>, transform_indices = @transform_4, window_bounds = array<i64: 32, 32>}, {pipeline_mode = #tpu.pipeline_mode<synchronous>, transform_indices = @transform_5, window_bounds = array<i64: 32, 32>}, {pipeline_mode = #tpu.pipeline_mode<synchronous>, transform_indices = @transform_6, window_bounds = array<i64: 1, 32>}, {pipeline_mode = #tpu.pipeline_mode<synchronous>, transform_indices = @transform_7, window_bounds = array<i64: 32, 4>}, {pipeline_mode = #tpu.pipeline_mode<synchronous>, transform_indices = @transform_8, window_bounds = array<i64: 1, 4>}, {transform_indices = @transform_9, window_bounds = array<i64: 16, 4>}]} {
    %c0 = arith.constant 0 : index
    %c0_0 = arith.constant 0 : index
    %0 = vector.load %arg2[%c0, %c0_0] : memref<16x32xf32, #tpu.memory_space<vmem>>, vector<16x32xf32>
    %c0_1 = arith.constant 0 : index
    %c0_2 = arith.constant 0 : index
    %1 = vector.load %arg3[%c0_1, %c0_2] : memref<32x32xf32, #tpu.memory_space<vmem>>, vector<32x32xf32>
    %c0_3 = arith.constant 0 : index
    %c0_4 = arith.constant 0 : index
    %2 = vector.load %arg4[%c0_3, %c0_4] : memref<1x32xf32, #tpu.memory_space<vmem>>, vector<1x32xf32>
    %c0_5 = arith.constant 0 : index
    %c0_6 = arith.constant 0 : index
    %c0_7 = arith.constant 0 : index
    %3 = vector.load %arg1[%c0_5, %c0_6, %c0_7] : memref<8x16x16xf32, #tpu.memory_space<vmem>>, vector<8x16x16xf32>
    %4 = vector.shape_cast %3 : vector<8x16x16xf32> to vector<128x16xf32>
    %cst = arith.constant dense<0.000000e+00> : vector<128x32xf32>
    %5 = tpu.matmul %4, %0, %cst {dimension_numbers = #tpu.dot_dimension_numbers<[1], [0], [0], [1], [0, 0, 1, 1], [], []>} : vector<128x16xf32>, vector<16x32xf32>, vector<128x32xf32> -> vector<128x32xf32>
    %6 = vector.broadcast %2 : vector<1x32xf32> to vector<128x32xf32>
    %7 = arith.addf %5, %6 : vector<128x32xf32>
    %8 = vector.shape_cast %7 : vector<128x32xf32> to vector<8x16x32xf32>
    %c0_8 = arith.constant 0 : index
    %c0_9 = arith.constant 0 : index
    %c0_10 = arith.constant 0 : index
    %9 = vector.load %arg11[%c0_8, %c0_9, %c0_10] : memref<8x16x32xf32, #tpu.memory_space<vmem>>, vector<8x16x32xf32>
    tpu.vector_store %arg11[%c0_8, %c0_9, %c0_10], %8 {strides = array<i32>} : memref<8x16x32xf32, #tpu.memory_space<vmem>>, vector<8x16x32xf32>,
    %cst_11 = arith.constant 0.000000e+00 : f32
    %10 = vector.broadcast %cst_11 : f32 to vector<16x32xf32>
    %c0_i32 = arith.constant 0 : i32
    %11 = arith.index_cast %c0_i32 : i32 to index
    %c0_12 = arith.constant 0 : index
    %c0_13 = arith.constant 0 : index
    %12 = vector.load %arg11[%11, %c0_12, %c0_13] : memref<8x16x32xf32, #tpu.memory_space<vmem>>, vector<1x16x32xf32>
    %13 = vector.shape_cast %12 : vector<1x16x32xf32> to vector<16x32xf32>
    %cst_14 = arith.constant dense<0.000000e+00> : vector<16x32xf32>
    %14 = tpu.matmul %10, %1, %cst_14 {dimension_numbers = #tpu.dot_dimension_numbers<[1], [0], [0], [1], [0, 0, 1, 1], [], []>} : vector<16x32xf32>, vector<32x32xf32>, vector<16x32xf32> -> vector<16x32xf32>
    %15 = arith.addf %13, %14 : vector<16x32xf32>
    %16 = math.tanh %15 : vector<16x32xf32>
    %17 = arith.index_cast %c0_i32 : i32 to index
    %c0_15 = arith.constant 0 : index
    %c0_16 = arith.constant 0 : index
    %18 = vector.load %arg11[%17, %c0_15, %c0_16] : memref<8x16x32xf32, #tpu.memory_space<vmem>>, vector<1x16x32xf32>
    %19 = vector.shape_cast %18 : vector<1x16x32xf32> to vector<16x32xf32>
    %20 = vector.shape_cast %16 : vector<16x32xf32> to vector<1x16x32xf32>
    tpu.vector_store %arg11[%17, %c0_15, %c0_16], %20 {strides = array<i32>} : memref<8x16x32xf32, #tpu.memory_space<vmem>>, vector<1x16x32xf32>,
    %c1_i32 = arith.constant 1 : i32
    %21 = arith.index_cast %c1_i32 : i32 to index
    %c0_17 = arith.constant 0 : index
    %c0_18 = arith.constant 0 : index
    %22 = vector.load %arg11[%21, %c0_17, %c0_18] : memref<8x16x32xf32, #tpu.memory_space<vmem>>, vector<1x16x32xf32>
    %23 = vector.shape_cast %22 : vector<1x16x32xf32> to vector<16x32xf32>
    %cst_19 = arith.constant dense<0.000000e+00> : vector<16x32xf32>
    %24 = tpu.matmul %16, %1, %cst_19 {dimension_numbers = #tpu.dot_dimension_numbers<[1], [0], [0], [1], [0, 0, 1, 1], [], []>} : vector<16x32xf32>, vector<32x32xf32>, vector<16x32xf32> -> vector<16x32xf32>
    %25 = arith.addf %23, %24 : vector<16x32xf32>
    %26 = math.tanh %25 : vector<16x32xf32>
    %27 = arith.index_cast %c1_i32 : i32 to index
    %c0_20 = arith.constant 0 : index
    %c0_21 = arith.constant 0 : index
    %28 = vector.load %arg11[%27, %c0_20, %c0_21] : memref<8x16x32xf32, #tpu.memory_space<vmem>>, vector<1x16x32xf32>
    %29 = vector.shape_cast %28 : vector<1x16x32xf32> to vector<16x32xf32>
    %30 = vector.shape_cast %26 : vector<16x32xf32> to vector<1x16x32xf32>
    tpu.vector_store %arg11[%27, %c0_20, %c0_21], %30 {strides = array<i32>} : memref<8x16x32xf32, #tpu.memory_space<vmem>>, vector<1x16x32xf32>,
    %c2_i32 = arith.constant 2 : i32
    %31 = arith.index_cast %c2_i32 : i32 to index
    %c0_22 = arith.constant 0 : index
    %c0_23 = arith.constant 0 : index
    %32 = vector.load %arg11[%31, %c0_22, %c0_23] : memref<8x16x32xf32, #tpu.memory_space<vmem>>, vector<1x16x32xf32>
    %33 = vector.shape_cast %32 : vector<1x16x32xf32> to vector<16x32xf32>
    %cst_24 = arith.constant dense<0.000000e+00> : vector<16x32xf32>
    %34 = tpu.matmul %26, %1, %cst_24 {dimension_numbers = #tpu.dot_dimension_numbers<[1], [0], [0], [1], [0, 0, 1, 1], [], []>} : vector<16x32xf32>, vector<32x32xf32>, vector<16x32xf32> -> vector<16x32xf32>
    %35 = arith.addf %33, %34 : vector<16x32xf32>
    %36 = math.tanh %35 : vector<16x32xf32>
    %37 = arith.index_cast %c2_i32 : i32 to index
    %c0_25 = arith.constant 0 : index
    %c0_26 = arith.constant 0 : index
    %38 = vector.load %arg11[%37, %c0_25, %c0_26] : memref<8x16x32xf32, #tpu.memory_space<vmem>>, vector<1x16x32xf32>
    %39 = vector.shape_cast %38 : vector<1x16x32xf32> to vector<16x32xf32>
    %40 = vector.shape_cast %36 : vector<16x32xf32> to vector<1x16x32xf32>
    tpu.vector_store %arg11[%37, %c0_25, %c0_26], %40 {strides = array<i32>} : memref<8x16x32xf32, #tpu.memory_space<vmem>>, vector<1x16x32xf32>,
    %c3_i32 = arith.constant 3 : i32
    %41 = arith.index_cast %c3_i32 : i32 to index
    %c0_27 = arith.constant 0 : index
    %c0_28 = arith.constant 0 : index
    %42 = vector.load %arg11[%41, %c0_27, %c0_28] : memref<8x16x32xf32, #tpu.memory_space<vmem>>, vector<1x16x32xf32>
    %43 = vector.shape_cast %42 : vector<1x16x32xf32> to vector<16x32xf32>
    %cst_29 = arith.constant dense<0.000000e+00> : vector<16x32xf32>
    %44 = tpu.matmul %36, %1, %cst_29 {dimension_numbers = #tpu.dot_dimension_numbers<[1], [0], [0], [1], [0, 0, 1, 1], [], []>} : vector<16x32xf32>, vector<32x32xf32>, vector<16x32xf32> -> vector<16x32xf32>
    %45 = arith.addf %43, %44 : vector<16x32xf32>
    %46 = math.tanh %45 : vector<16x32xf32>
    %47 = arith.index_cast %c3_i32 : i32 to index
    %c0_30 = arith.constant 0 : index
    %c0_31 = arith.constant 0 : index
    %48 = vector.load %arg11[%47, %c0_30, %c0_31] : memref<8x16x32xf32, #tpu.memory_space<vmem>>, vector<1x16x32xf32>
    %49 = vector.shape_cast %48 : vector<1x16x32xf32> to vector<16x32xf32>
    %50 = vector.shape_cast %46 : vector<16x32xf32> to vector<1x16x32xf32>
    tpu.vector_store %arg11[%47, %c0_30, %c0_31], %50 {strides = array<i32>} : memref<8x16x32xf32, #tpu.memory_space<vmem>>, vector<1x16x32xf32>,
    %c4_i32 = arith.constant 4 : i32
    %51 = arith.index_cast %c4_i32 : i32 to index
    %c0_32 = arith.constant 0 : index
    %c0_33 = arith.constant 0 : index
    %52 = vector.load %arg11[%51, %c0_32, %c0_33] : memref<8x16x32xf32, #tpu.memory_space<vmem>>, vector<1x16x32xf32>
    %53 = vector.shape_cast %52 : vector<1x16x32xf32> to vector<16x32xf32>
    %cst_34 = arith.constant dense<0.000000e+00> : vector<16x32xf32>
    %54 = tpu.matmul %46, %1, %cst_34 {dimension_numbers = #tpu.dot_dimension_numbers<[1], [0], [0], [1], [0, 0, 1, 1], [], []>} : vector<16x32xf32>, vector<32x32xf32>, vector<16x32xf32> -> vector<16x32xf32>
    %55 = arith.addf %53, %54 : vector<16x32xf32>
    %56 = math.tanh %55 : vector<16x32xf32>
    %57 = arith.index_cast %c4_i32 : i32 to index
    %c0_35 = arith.constant 0 : index
    %c0_36 = arith.constant 0 : index
    %58 = vector.load %arg11[%57, %c0_35, %c0_36] : memref<8x16x32xf32, #tpu.memory_space<vmem>>, vector<1x16x32xf32>
    %59 = vector.shape_cast %58 : vector<1x16x32xf32> to vector<16x32xf32>
    %60 = vector.shape_cast %56 : vector<16x32xf32> to vector<1x16x32xf32>
    tpu.vector_store %arg11[%57, %c0_35, %c0_36], %60 {strides = array<i32>} : memref<8x16x32xf32, #tpu.memory_space<vmem>>, vector<1x16x32xf32>,
    %c5_i32 = arith.constant 5 : i32
    %61 = arith.index_cast %c5_i32 : i32 to index
    %c0_37 = arith.constant 0 : index
    %c0_38 = arith.constant 0 : index
    %62 = vector.load %arg11[%61, %c0_37, %c0_38] : memref<8x16x32xf32, #tpu.memory_space<vmem>>, vector<1x16x32xf32>
    %63 = vector.shape_cast %62 : vector<1x16x32xf32> to vector<16x32xf32>
    %cst_39 = arith.constant dense<0.000000e+00> : vector<16x32xf32>
    %64 = tpu.matmul %56, %1, %cst_39 {dimension_numbers = #tpu.dot_dimension_numbers<[1], [0], [0], [1], [0, 0, 1, 1], [], []>} : vector<16x32xf32>, vector<32x32xf32>, vector<16x32xf32> -> vector<16x32xf32>
    %65 = arith.addf %63, %64 : vector<16x32xf32>
    %66 = math.tanh %65 : vector<16x32xf32>
    %67 = arith.index_cast %c5_i32 : i32 to index
    %c0_40 = arith.constant 0 : index
    %c0_41 = arith.constant 0 : index
    %68 = vector.load %arg11[%67, %c0_40, %c0_41] : memref<8x16x32xf32, #tpu.memory_space<vmem>>, vector<1x16x32xf32>
    %69 = vector.shape_cast %68 : vector<1x16x32xf32> to vector<16x32xf32>
    %70 = vector.shape_cast %66 : vector<16x32xf32> to vector<1x16x32xf32>
    tpu.vector_store %arg11[%67, %c0_40, %c0_41], %70 {strides = array<i32>} : memref<8x16x32xf32, #tpu.memory_space<vmem>>, vector<1x16x32xf32>,
    %c6_i32 = arith.constant 6 : i32
    %71 = arith.index_cast %c6_i32 : i32 to index
    %c0_42 = arith.constant 0 : index
    %c0_43 = arith.constant 0 : index
    %72 = vector.load %arg11[%71, %c0_42, %c0_43] : memref<8x16x32xf32, #tpu.memory_space<vmem>>, vector<1x16x32xf32>
    %73 = vector.shape_cast %72 : vector<1x16x32xf32> to vector<16x32xf32>
    %cst_44 = arith.constant dense<0.000000e+00> : vector<16x32xf32>
    %74 = tpu.matmul %66, %1, %cst_44 {dimension_numbers = #tpu.dot_dimension_numbers<[1], [0], [0], [1], [0, 0, 1, 1], [], []>} : vector<16x32xf32>, vector<32x32xf32>, vector<16x32xf32> -> vector<16x32xf32>
    %75 = arith.addf %73, %74 : vector<16x32xf32>
    %76 = math.tanh %75 : vector<16x32xf32>
    %77 = arith.index_cast %c6_i32 : i32 to index
    %c0_45 = arith.constant 0 : index
    %c0_46 = arith.constant 0 : index
    %78 = vector.load %arg11[%77, %c0_45, %c0_46] : memref<8x16x32xf32, #tpu.memory_space<vmem>>, vector<1x16x32xf32>
    %79 = vector.shape_cast %78 : vector<1x16x32xf32> to vector<16x32xf32>
    %80 = vector.shape_cast %76 : vector<16x32xf32> to vector<1x16x32xf32>
    tpu.vector_store %arg11[%77, %c0_45, %c0_46], %80 {strides = array<i32>} : memref<8x16x32xf32, #tpu.memory_space<vmem>>, vector<1x16x32xf32>,
    %c7_i32 = arith.constant 7 : i32
    %81 = arith.index_cast %c7_i32 : i32 to index
    %c0_47 = arith.constant 0 : index
    %c0_48 = arith.constant 0 : index
    %82 = vector.load %arg11[%81, %c0_47, %c0_48] : memref<8x16x32xf32, #tpu.memory_space<vmem>>, vector<1x16x32xf32>
    %83 = vector.shape_cast %82 : vector<1x16x32xf32> to vector<16x32xf32>
    %cst_49 = arith.constant dense<0.000000e+00> : vector<16x32xf32>
    %84 = tpu.matmul %76, %1, %cst_49 {dimension_numbers = #tpu.dot_dimension_numbers<[1], [0], [0], [1], [0, 0, 1, 1], [], []>} : vector<16x32xf32>, vector<32x32xf32>, vector<16x32xf32> -> vector<16x32xf32>
    %85 = arith.addf %83, %84 : vector<16x32xf32>
    %86 = math.tanh %85 : vector<16x32xf32>
    %87 = arith.index_cast %c7_i32 : i32 to index
    %c0_50 = arith.constant 0 : index
    %c0_51 = arith.constant 0 : index
    %88 = vector.load %arg11[%87, %c0_50, %c0_51] : memref<8x16x32xf32, #tpu.memory_space<vmem>>, vector<1x16x32xf32>
    %89 = vector.shape_cast %88 : vector<1x16x32xf32> to vector<16x32xf32>
    %90 = vector.shape_cast %86 : vector<16x32xf32> to vector<1x16x32xf32>
    tpu.vector_store %arg11[%87, %c0_50, %c0_51], %90 {strides = array<i32>} : memref<8x16x32xf32, #tpu.memory_space<vmem>>, vector<1x16x32xf32>,
    %c8_i32 = arith.constant 8 : i32
    %c0_52 = arith.constant 0 : index
    %c0_53 = arith.constant 0 : index
    %91 = vector.load %arg5[%c0_52, %c0_53] : memref<32x32xf32, #tpu.memory_space<vmem>>, vector<32x32xf32>
    %c0_54 = arith.constant 0 : index
    %c0_55 = arith.constant 0 : index
    %92 = vector.load %arg6[%c0_54, %c0_55] : memref<32x32xf32, #tpu.memory_space<vmem>>, vector<32x32xf32>
    %c0_56 = arith.constant 0 : index
    %c0_57 = arith.constant 0 : index
    %93 = vector.load %arg7[%c0_56, %c0_57] : memref<1x32xf32, #tpu.memory_space<vmem>>, vector<1x32xf32>
    %c0_58 = arith.constant 0 : index
    %c0_59 = arith.constant 0 : index
    %c0_60 = arith.constant 0 : index
    %94 = vector.load %arg11[%c0_58, %c0_59, %c0_60] : memref<8x16x32xf32, #tpu.memory_space<vmem>>, vector<8x16x32xf32>
    %95 = vector.shape_cast %94 : vector<8x16x32xf32> to vector<128x32xf32>
    %cst_61 = arith.constant dense<0.000000e+00> : vector<128x32xf32>
    %96 = tpu.matmul %95, %91, %cst_61 {dimension_numbers = #tpu.dot_dimension_numbers<[1], [0], [0], [1], [0, 0, 1, 1], [], []>} : vector<128x32xf32>, vector<32x32xf32>, vector<128x32xf32> -> vector<128x32xf32>
    %97 = vector.broadcast %93 : vector<1x32xf32> to vector<128x32xf32>
    %98 = arith.addf %96, %97 : vector<128x32xf32>
    %99 = vector.shape_cast %98 : vector<128x32xf32> to vector<8x16x32xf32>
    %c0_62 = arith.constant 0 : index
    %c0_63 = arith.constant 0 : index
    %c0_64 = arith.constant 0 : index
    %100 = vector.load %arg11[%c0_62, %c0_63, %c0_64] : memref<8x16x32xf32, #tpu.memory_space<vmem>>, vector<8x16x32xf32>
    tpu.vector_store %arg11[%c0_62, %c0_63, %c0_64], %99 {strides = array<i32>} : memref<8x16x32xf32, #tpu.memory_space<vmem>>, vector<8x16x32xf32>,
    %cst_65 = arith.constant 0.000000e+00 : f32
    %101 = vector.broadcast %cst_65 : f32 to vector<16x32xf32>
    %c0_i32_66 = arith.constant 0 : i32
    %102 = arith.index_cast %c0_i32_66 : i32 to index
    %c0_67 = arith.constant 0 : index
    %c0_68 = arith.constant 0 : index
    %103 = vector.load %arg11[%102, %c0_67, %c0_68] : memref<8x16x32xf32, #tpu.memory_space<vmem>>, vector<1x16x32xf32>
    %104 = vector.shape_cast %103 : vector<1x16x32xf32> to vector<16x32xf32>
    %cst_69 = arith.constant dense<0.000000e+00> : vector<16x32xf32>
    %105 = tpu.matmul %101, %92, %cst_69 {dimension_numbers = #tpu.dot_dimension_numbers<[1], [0], [0], [1], [0, 0, 1, 1], [], []>} : vector<16x32xf32>, vector<32x32xf32>, vector<16x32xf32> -> vector<16x32xf32>
    %106 = arith.addf %104, %105 : vector<16x32xf32>
    %107 = math.tanh %106 : vector<16x32xf32>
    %c1_i32_70 = arith.constant 1 : i32
    %108 = arith.index_cast %c1_i32_70 : i32 to index
    %c0_71 = arith.constant 0 : index
    %c0_72 = arith.constant 0 : index
    %109 = vector.load %arg11[%108, %c0_71, %c0_72] : memref<8x16x32xf32, #tpu.memory_space<vmem>>, vector<1x16x32xf32>
    %110 = vector.shape_cast %109 : vector<1x16x32xf32> to vector<16x32xf32>
    %cst_73 = arith.constant dense<0.000000e+00> : vector<16x32xf32>
    %111 = tpu.matmul %107, %92, %cst_73 {dimension_numbers = #tpu.dot_dimension_numbers<[1], [0], [0], [1], [0, 0, 1, 1], [], []>} : vector<16x32xf32>, vector<32x32xf32>, vector<16x32xf32> -> vector<16x32xf32>
    %112 = arith.addf %110, %111 : vector<16x32xf32>
    %113 = math.tanh %112 : vector<16x32xf32>
    %c2_i32_74 = arith.constant 2 : i32
    %114 = arith.index_cast %c2_i32_74 : i32 to index
    %c0_75 = arith.constant 0 : index
    %c0_76 = arith.constant 0 : index
    %115 = vector.load %arg11[%114, %c0_75, %c0_76] : memref<8x16x32xf32, #tpu.memory_space<vmem>>, vector<1x16x32xf32>
    %116 = vector.shape_cast %115 : vector<1x16x32xf32> to vector<16x32xf32>
    %cst_77 = arith.constant dense<0.000000e+00> : vector<16x32xf32>
    %117 = tpu.matmul %113, %92, %cst_77 {dimension_numbers = #tpu.dot_dimension_numbers<[1], [0], [0], [1], [0, 0, 1, 1], [], []>} : vector<16x32xf32>, vector<32x32xf32>, vector<16x32xf32> -> vector<16x32xf32>
    %118 = arith.addf %116, %117 : vector<16x32xf32>
    %119 = math.tanh %118 : vector<16x32xf32>
    %c3_i32_78 = arith.constant 3 : i32
    %120 = arith.index_cast %c3_i32_78 : i32 to index
    %c0_79 = arith.constant 0 : index
    %c0_80 = arith.constant 0 : index
    %121 = vector.load %arg11[%120, %c0_79, %c0_80] : memref<8x16x32xf32, #tpu.memory_space<vmem>>, vector<1x16x32xf32>
    %122 = vector.shape_cast %121 : vector<1x16x32xf32> to vector<16x32xf32>
    %cst_81 = arith.constant dense<0.000000e+00> : vector<16x32xf32>
    %123 = tpu.matmul %119, %92, %cst_81 {dimension_numbers = #tpu.dot_dimension_numbers<[1], [0], [0], [1], [0, 0, 1, 1], [], []>} : vector<16x32xf32>, vector<32x32xf32>, vector<16x32xf32> -> vector<16x32xf32>
    %124 = arith.addf %122, %123 : vector<16x32xf32>
    %125 = math.tanh %124 : vector<16x32xf32>
    %c4_i32_82 = arith.constant 4 : i32
    %126 = arith.index_cast %c4_i32_82 : i32 to index
    %c0_83 = arith.constant 0 : index
    %c0_84 = arith.constant 0 : index
    %127 = vector.load %arg11[%126, %c0_83, %c0_84] : memref<8x16x32xf32, #tpu.memory_space<vmem>>, vector<1x16x32xf32>
    %128 = vector.shape_cast %127 : vector<1x16x32xf32> to vector<16x32xf32>
    %cst_85 = arith.constant dense<0.000000e+00> : vector<16x32xf32>
    %129 = tpu.matmul %125, %92, %cst_85 {dimension_numbers = #tpu.dot_dimension_numbers<[1], [0], [0], [1], [0, 0, 1, 1], [], []>} : vector<16x32xf32>, vector<32x32xf32>, vector<16x32xf32> -> vector<16x32xf32>
    %130 = arith.addf %128, %129 : vector<16x32xf32>
    %131 = math.tanh %130 : vector<16x32xf32>
    %c5_i32_86 = arith.constant 5 : i32
    %132 = arith.index_cast %c5_i32_86 : i32 to index
    %c0_87 = arith.constant 0 : index
    %c0_88 = arith.constant 0 : index
    %133 = vector.load %arg11[%132, %c0_87, %c0_88] : memref<8x16x32xf32, #tpu.memory_space<vmem>>, vector<1x16x32xf32>
    %134 = vector.shape_cast %133 : vector<1x16x32xf32> to vector<16x32xf32>
    %cst_89 = arith.constant dense<0.000000e+00> : vector<16x32xf32>
    %135 = tpu.matmul %131, %92, %cst_89 {dimension_numbers = #tpu.dot_dimension_numbers<[1], [0], [0], [1], [0, 0, 1, 1], [], []>} : vector<16x32xf32>, vector<32x32xf32>, vector<16x32xf32> -> vector<16x32xf32>
    %136 = arith.addf %134, %135 : vector<16x32xf32>
    %137 = math.tanh %136 : vector<16x32xf32>
    %c6_i32_90 = arith.constant 6 : i32
    %138 = arith.index_cast %c6_i32_90 : i32 to index
    %c0_91 = arith.constant 0 : index
    %c0_92 = arith.constant 0 : index
    %139 = vector.load %arg11[%138, %c0_91, %c0_92] : memref<8x16x32xf32, #tpu.memory_space<vmem>>, vector<1x16x32xf32>
    %140 = vector.shape_cast %139 : vector<1x16x32xf32> to vector<16x32xf32>
    %cst_93 = arith.constant dense<0.000000e+00> : vector<16x32xf32>
    %141 = tpu.matmul %137, %92, %cst_93 {dimension_numbers = #tpu.dot_dimension_numbers<[1], [0], [0], [1], [0, 0, 1, 1], [], []>} : vector<16x32xf32>, vector<32x32xf32>, vector<16x32xf32> -> vector<16x32xf32>
    %142 = arith.addf %140, %141 : vector<16x32xf32>
    %143 = math.tanh %142 : vector<16x32xf32>
    %c7_i32_94 = arith.constant 7 : i32
    %144 = arith.index_cast %c7_i32_94 : i32 to index
    %c0_95 = arith.constant 0 : index
    %c0_96 = arith.constant 0 : index
    %145 = vector.load %arg11[%144, %c0_95, %c0_96] : memref<8x16x32xf32, #tpu.memory_space<vmem>>, vector<1x16x32xf32>
    %146 = vector.shape_cast %145 : vector<1x16x32xf32> to vector<16x32xf32>
    %cst_97 = arith.constant dense<0.000000e+00> : vector<16x32xf32>
    %147 = tpu.matmul %143, %92, %cst_97 {dimension_numbers = #tpu.dot_dimension_numbers<[1], [0], [0], [1], [0, 0, 1, 1], [], []>} : vector<16x32xf32>, vector<32x32xf32>, vector<16x32xf32> -> vector<16x32xf32>
    %148 = arith.addf %146, %147 : vector<16x32xf32>
    %149 = math.tanh %148 : vector<16x32xf32>
    %c8_i32_98 = arith.constant 8 : i32
    %c0_99 = arith.constant 0 : index
    %c0_100 = arith.constant 0 : index
    %150 = vector.load %arg8[%c0_99, %c0_100] : memref<32x4xf32, #tpu.memory_space<vmem>>, vector<32x4xf32>
    %cst_101 = arith.constant dense<0.000000e+00> : vector<16x4xf32>
    %151 = tpu.matmul %149, %150, %cst_101 {dimension_numbers = #tpu.dot_dimension_numbers<[1], [0], [0], [1], [0, 0, 1, 1], [], []>} : vector<16x32xf32>, vector<32x4xf32>, vector<16x4xf32> -> vector<16x4xf32>
    %c0_102 = arith.constant 0 : index
    %c0_103 = arith.constant 0 : index
    %152 = vector.load %arg9[%c0_102, %c0_103] : memref<1x4xf32, #tpu.memory_space<vmem>>, vector<1x4xf32>
    %153 = vector.broadcast %152 : vector<1x4xf32> to vector<16x4xf32>
    %154 = arith.addf %151, %153 : vector<16x4xf32>
    %c0_104 = arith.constant 0 : index
    %c0_105 = arith.constant 0 : index
    %155 = vector.load %arg10[%c0_104, %c0_105] : memref<16x4xf32, #tpu.memory_space<vmem>>, vector<16x4xf32>
    tpu.vector_store %arg10[%c0_104, %c0_105], %154 {strides = array<i32>} : memref<16x4xf32, #tpu.memory_space<vmem>>, vector<16x4xf32>,
    return
  }
  func.func @transform_0(%arg0: i32) -> (i32, i32, i32) {
    %c0_i32 = arith.constant 0 : i32
    %c0_i32_0 = arith.constant 0 : i32
    %c0_i32_1 = arith.constant 0 : i32
    return %c0_i32, %arg0, %c0_i32_0 : i32, i32, i32
  }
  func.func @transform_1(%arg0: i32) -> (i32, i32) {
    %c0_i32 = arith.constant 0 : i32
    %c0_i32_0 = arith.constant 0 : i32
    %c0_i32_1 = arith.constant 0 : i32
    return %c0_i32, %c0_i32_0 : i32, i32
  }
  func.func @transform_2(%arg0: i32) -> (i32, i32) {
    %c0_i32 = arith.constant 0 : i32
    %c0_i32_0 = arith.constant 0 : i32
    %c0_i32_1 = arith.constant 0 : i32
    return %c0_i32, %c0_i32_0 : i32, i32
  }
  func.func @transform_3(%arg0: i32) -> (i32, i32) {
    %c0_i32 = arith.constant 0 : i32
    %c0_i32_0 = arith.constant 0 : i32
    %c0_i32_1 = arith.constant 0 : i32
    return %c0_i32, %c0_i32_0 : i32, i32
  }
  func.func @transform_4(%arg0: i32) -> (i32, i32) {
    %c0_i32 = arith.constant 0 : i32
    %c0_i32_0 = arith.constant 0 : i32
    %c0_i32_1 = arith.constant 0 : i32
    return %c0_i32, %c0_i32_0 : i32, i32
  }
  func.func @transform_5(%arg0: i32) -> (i32, i32) {
    %c0_i32 = arith.constant 0 : i32
    %c0_i32_0 = arith.constant 0 : i32
    %c0_i32_1 = arith.constant 0 : i32
    return %c0_i32, %c0_i32_0 : i32, i32
  }
  func.func @transform_6(%arg0: i32) -> (i32, i32) {
    %c0_i32 = arith.constant 0 : i32
    %c0_i32_0 = arith.constant 0 : i32
    %c0_i32_1 = arith.constant 0 : i32
    return %c0_i32, %c0_i32_0 : i32, i32
  }
  func.func @transform_7(%arg0: i32) -> (i32, i32) {
    %c0_i32 = arith.constant 0 : i32
    %c0_i32_0 = arith.constant 0 : i32
    %c0_i32_1 = arith.constant 0 : i32
    return %c0_i32, %c0_i32_0 : i32, i32
  }
  func.func @transform_8(%arg0: i32) -> (i32, i32) {
    %c0_i32 = arith.constant 0 : i32
    %c0_i32_0 = arith.constant 0 : i32
    %c0_i32_1 = arith.constant 0 : i32
    return %c0_i32, %c0_i32_0 : i32, i32
  }
  func.func @transform_9(%arg0: i32) -> (i32, i32) {
    %c0_i32 = arith.constant 0 : i32
    %c0_i32_0 = arith.constant 0 : i32
    return %arg0, %c0_i32 : i32, i32
  }
}

</mosaic_0001>

<bundles_post_ra>
// kernel: tpu_custom_call.1
= control target key start
LH: loop header
LB: loop body
LE: loop exit
PB: predicated region body
PF: predicated region fallthrough
CT: control target
= control target key end

     0   :  { %14 = vsyncpa [#allocation4], 0  ;;  %s3098_s0 = inlined_call_operand.hbm [shape: f32[8,16,16], index: 0, kind: input, shape index: {}]   ;;  %s3099_s1 = inlined_call_operand.hbm [shape: f32[16,32], index: 1, kind: input, shape index: {}]   ;;  %s3100_s2 = inlined_call_operand.vmem [shape: f32[32,32], index: 2, kind: input, shape index: {}]   ;;  %s3101_s3 = inlined_call_operand.vmem [shape: f32[1,32], index: 3, kind: input, shape index: {}]   ;;  %s3102_s4 = inlined_call_operand.hbm [shape: f32[32,32], index: 4, kind: input, shape index: {}]   ;;  %s3103_s5 = inlined_call_operand.hbm [shape: f32[32,32], index: 5, kind: input, shape index: {}]   ;;  %s3104_s6 = inlined_call_operand.vmem [shape: f32[1,32], index: 6, kind: input, shape index: {}]   ;;  %s3105_s7 = inlined_call_operand.vmem [shape: f32[32,4], index: 7, kind: input, shape index: {}]   ;;  %s3106_s8 = inlined_call_operand.vmem [shape: f32[1,4], index: 8, kind: input, shape index: {}]   ;;  %s3107_s9 = inlined_call_operand.vmem [shape: f32[16,4], index: 9, kind: output, shape index: {}]  }
   0x1   :  { %15 = vsyncpa [#allocation6], 0 }
   0x2   :  { %16 = vsyncpa [#allocation9], 0  ;;  %s2684_s30 = smov [#allocation5]   ;;  %s2685_s11 = smov [#allocation3]  }
   0x3   :  { %s34_s10 = sshll.u32 %s2684_s30, 4  ;;  %s22_s12 = sshll.u32 %s2685_s11, 4  ;;  %s35_s10 = int_to_ptr.vmem [resolvable:$true] %s34_s10  ;;  %s23_s12 = int_to_ptr.vmem [resolvable:$true] %s22_s12 }
   0x4   :  { %s2606_s13 = scalar_lea.vmem %s35_s10, 256  ;;  %p2611_p1 = scmp.lt.s32.totalorder %s35_s10, %s35_s10 }
   0x5   :  { %p2607_p0 = scmp.ne.s32.totalorder %s35_s10, %s2606_s13  ;;  %p2612_p2 = scmp.lt.s32.totalorder %s2606_s13, %s2606_s13 }
   0x7   :  { %p2613_p3 = por %p2612_p2, %p2611_p1 }
   0x9   :  { %p2614_p4 = pnand %p2613_p3, %p2607_p0 }
   0xb   :  { %2617 = shalt.err (!%p2614_p4)
}
   0xc   :  { %s2686_s14 = smov 128   ;;  %s2687_s15 = smov 8  }
   0xd   :  { %40 = dma.hbm_to_vmem [thread:$0]  %s3099_s1, 256, %s35_s10, [#allocation6], %s2686_s14, %s2686_s14, %s2687_s15  }
   0xe   :  { %s2626_s18 = scalar_lea.vmem %s23_s12, 2048  ;;  %p2631_p6 = scmp.lt.s32.totalorder %s23_s12, %s23_s12 }
   0xf   :  { %p2627_p5 = scmp.ne.s32.totalorder %s23_s12, %s2626_s18  ;;  %p2632_p7 = scmp.lt.s32.totalorder %s2626_s18, %s2626_s18 }
  0x11   :  { %p2633_p8 = por %p2632_p7, %p2631_p6 }
  0x13   :  { %p2634_p9 = pnand %p2633_p8, %p2627_p5 }
  0x15   :  { %2637 = shalt.err (!%p2634_p9)
}
  0x16   :  { %28 = dma.hbm_to_vmem [thread:$0]  %s3098_s0, 2048, %s23_s12, [#allocation4], %s2686_s14, %s2686_s14, %s2687_s15  }
  0x17   :  { %s2688_s21 = smov [#allocation7]   ;;  %s2689_s23 = smov [#allocation8]  }
  0x18   :  { %s50_s22 = sshll.u32 %s2688_s21, 4  ;;  %s62_s24 = sshll.u32 %s2689_s23, 4  ;;  %s51_s22 = int_to_ptr.vmem [resolvable:$true] %s50_s22  ;;  %s63_s24 = int_to_ptr.vmem [resolvable:$true] %s62_s24 }
  0x19   :  { %s2646_s1 = scalar_lea.vmem %s51_s22, 512  ;;  %p2651_p11 = scmp.lt.s32.totalorder %s51_s22, %s51_s22 }
  0x1a   :  { %p2647_p10 = scmp.ne.s32.totalorder %s51_s22, %s2646_s1  ;;  %p2652_p12 = scmp.lt.s32.totalorder %s2646_s1, %s2646_s1 }
  0x1c   :  { %p2653_p13 = por %p2652_p12, %p2651_p11 }
  0x1e   :  { %p2654_p0 = pnand %p2653_p13, %p2647_p10 }
  0x20   :  { %2657 = shalt.err (!%p2654_p0)
}
  0x21   :  { %56 = dma.hbm_to_vmem [thread:$0]  %s3102_s4, 512, %s51_s22, [#allocation6], %s2686_s14, %s2686_s14, %s2687_s15  }
  0x22   :  { %s2666_s0 = scalar_lea.vmem %s63_s24, 512  ;;  %p2671_p2 = scmp.lt.s32.totalorder %s63_s24, %s63_s24 }
  0x23   :  { %p2667_p1 = scmp.ne.s32.totalorder %s63_s24, %s2666_s0  ;;  %p2672_p3 = scmp.lt.s32.totalorder %s2666_s0, %s2666_s0 }
  0x25   :  { %p2673_p4 = por %p2672_p3, %p2671_p2 }
  0x27   :  { %p2674_p5 = pnand %p2673_p4, %p2667_p1 }
  0x29   :  { %2677 = shalt.err (!%p2674_p5)
}
  0x2a   :  { %68 = dma.hbm_to_vmem [thread:$0]  %s3103_s5, 512, %s63_s24, [#allocation9], %s2686_s14, %s2686_s14, %s2687_s15  }
  0x2b   :  { %2678 = dma.done.wait [#allocation4], 2048  }
  0x2c   :  { %2679 = vsyncadd [#allocation4], 4294965248 }
  0x2d   :  { %2680 = dma.done.wait [#allocation6], 768  }
  0x2e   :  { %2681 = vsyncadd [#allocation6], 4294966528 }
  0x2f   :  { %2682 = dma.done.wait [#allocation9], 512  }
  0x30   :  { %2683 = vsyncadd [#allocation9], 4294966784  ;;  %v2690_v0 = vmov 0.0   ;;  %vm116_vm0 = vcmask 130048   ;;  %v88_v1 = vld [vmem:[#allocation5 + $0x8] sm:$0xff]  ;;  %v87_v2 = vld [vmem:[#allocation5] sm:$0xff] }
  0x31   :  { %2316 = vmatprep.mubr.f32.mxu1 %v2690_v0  ;;  %v94_v3 = vld [vmem:[#allocation3] sm:$0xff]  ;;  %2280 = vmatprep.subr.mxu0 %v88_v1  ;;  %v2770_v4 = vld [vmem:[%s3100_s2 + $0x18] sm:$0xff]  ;;  %v2775_v5 = vld [vmem:[%s3100_s2 + $0x10] sm:$0xff]  ;;  %vm310_vm1 = vcmask 261120   ;;  %vm2065_vm2 = vcmask 31744  }
  0x32   :  { %2284 = vmatprep.mubr.msk.f32.mxu0 %vm116_vm0, %v94_v3  ;;  %2281 = vmatpush3.msra.mxu0 %v88_v1  ;;  %v95_v6 = vld [vmem:[#allocation3 + $0x8] sm:$0xff]  ;;  %v2790_v8 = vld [vmem:[%s3100_s2] sm:$0xff]  ;;  %v96_v9 = vld [vmem:[#allocation3 + $0x10] sm:$0xff] }
  0x33   :  { %2308 = vmatprep.subr.mxu1 %v2770_v4  ;;  %2282 = vmatprep.subr.mxu0 %v87_v2  ;;  %v2782_v7 = vld [vmem:[%s3100_s2 + $0x8] sm:$0xff]  ;;  %v97_v10 = vld [vmem:[#allocation3 + $0x18] sm:$0xff]  ;;  %v2820_v11 = vld [vmem:[%s3101_s3] ss:$0 sm:$0xff] }
  0x34   :  { %2309 = vmatpush3.msra.mxu1 %v2770_v4  ;;  %2283 = vmatpush3.msra.mxu0 %v87_v2  ;;  %v98_v28 = vld [vmem:[#allocation3 + $0x20] sm:$0xff]  ;;  %v99_v29 = vld [vmem:[#allocation3 + $0x28] sm:$0xff]  ;;  %v100_v42 = vld [vmem:[#allocation3 + $0x30] sm:$0xff] }
  0x35   :  { %2310 = vmatprep.subr.mxu1 %v2775_v5  ;;  %2285 = vmatmul.mubr.msk.f32.vlgmr.msra.gmra.mxu0 %vm116_vm0, %v95_v6  ;;  %v101_v43 = vld [vmem:[#allocation3 + $0x38] sm:$0xff]  ;;  %v102_v56 = vld [vmem:[#allocation3 + $0x40] sm:$0xff]  ;;  %v103_v57 = vld [vmem:[#allocation3 + $0x48] sm:$0xff] }
  0x36   :  { %2311 = vmatpush3.msra.mxu1 %v2775_v5  ;;  %2352 = vmatprep.subr.mxu0 %v2770_v4  ;;  %v104_v58 = vld [vmem:[#allocation3 + $0x50] sm:$0xff]  ;;  %v105_v59 = vld [vmem:[#allocation3 + $0x58] sm:$0xff]  ;;  %v106_v60 = vld [vmem:[#allocation3 + $0x60] sm:$0xff] }
  0x37   :  { %2312 = vmatprep.subr.mxu1 %v2782_v7  ;;  %2353 = vmatpush3.msra.mxu0 %v2770_v4  ;;  %v107_v61 = vld [vmem:[#allocation3 + $0x68] sm:$0xff]  ;;  %v108_v62 = vld [vmem:[#allocation3 + $0x70] sm:$0xff]  ;;  %v109_v63 = vld [vmem:[#allocation3 + $0x78] sm:$0xff] }
  0x38   :  { %2313 = vmatpush3.msra.mxu1 %v2782_v7  ;;  %2354 = vmatprep.subr.mxu0 %v2775_v5 }
  0x39   :  { %2314 = vmatprep.subr.mxu1 %v2790_v8  ;;  %2355 = vmatpush3.msra.mxu0 %v2775_v5 }
  0x3a   :  { %2315 = vmatpush3.msra.mxu1 %v2790_v8  ;;  %2356 = vmatprep.subr.mxu0 %v2782_v7 }
  0x3b   :  { %2317 = vmatmul.mubr.f32.vlgmr.msra.gmra.mxu1 %v2690_v0  ;;  %2319 = vmatprep.subr.mxu1 %v2770_v4 }
  0x3c   :  { %2320 = vmatpush3.msra.mxu1 %v2770_v4  ;;  %2357 = vmatpush3.msra.mxu0 %v2782_v7 }
  0x3d   :  { %2321 = vmatprep.subr.mxu1 %v2775_v5  ;;  %2358 = vmatprep.subr.mxu0 %v2790_v8 }
  0x3e   :  { %2322 = vmatpush3.msra.mxu1 %v2775_v5  ;;  %2359 = vmatpush3.msra.mxu0 %v2790_v8 }
  0x3f   :  { %2323 = vmatprep.subr.mxu1 %v2782_v7  ;;  %2374 = vmatprep.subr.mxu0 %v2770_v4 }
  0x40   :  { %2324 = vmatpush3.msra.mxu1 %v2782_v7  ;;  %2287 = vmatprep.mubr.msk.f32.mxu0 %vm116_vm0, %v96_v9 }
  0x41   :  { %2325 = vmatprep.subr.mxu1 %v2790_v8  ;;  %2288 = vmatmul.mubr.msk.f32.gmra.mxu0 %vm116_vm0, %v97_v10 }
  0x42   :  { %2326 = vmatpush3.msra.mxu1 %v2790_v8  ;;  %2290 = vmatprep.mubr.msk.f32.mxu0 %vm116_vm0, %v98_v28 }
  0x43   :  { %2330 = vmatprep.subr.mxu1 %v2770_v4 }
  0x45   :  { %2291 = vmatmul.mubr.msk.f32.gmra.mxu0 %vm116_vm0, %v99_v29 }
  0x46   :  { %2293 = vmatprep.mubr.msk.f32.mxu0 %vm116_vm0, %v100_v42 }
  0x49   :  { %2294 = vmatmul.mubr.msk.f32.gmra.mxu0 %vm116_vm0, %v101_v43 }
  0x4a   :  { %2296 = vmatprep.mubr.msk.f32.mxu0 %vm116_vm0, %v102_v56 }
  0x4d   :  { %2297 = vmatmul.mubr.msk.f32.gmra.mxu0 %vm116_vm0, %v103_v57  ;;  %v2940_v57 = vld [vmem:[#allocation8 + $0x18] sm:$0xff] }
  0x4e   :  { %2299 = vmatprep.mubr.msk.f32.mxu0 %vm116_vm0, %v104_v58  ;;  %v2944_v58 = vld [vmem:[#allocation8 + $0x10] sm:$0xff] }
  0x51   :  { %2300 = vmatmul.mubr.msk.f32.gmra.mxu0 %vm116_vm0, %v105_v59  ;;  %v2948_v59 = vld [vmem:[#allocation8 + $0x8] sm:$0xff] }
  0x52   :  { %2302 = vmatprep.mubr.msk.f32.mxu0 %vm116_vm0, %v106_v60  ;;  %v2952_v60 = vld [vmem:[#allocation8] sm:$0xff] }
  0x55   :  { %2303 = vmatmul.mubr.msk.f32.gmra.mxu0 %vm116_vm0, %v107_v61 }
  0x56   :  { %2305 = vmatprep.mubr.msk.f32.mxu0 %vm116_vm0, %v108_v62 }
  0x59   :  { %2306 = vmatmul.mubr.msk.f32.gmra.mxu0 %vm116_vm0, %v109_v63 }
  0xf5   :  { %v2286_v12 = vpop.f32.mrf.mxu0 }
  0xf6   :  { %v237_v13 = vadd.f32 %v2286_v12, %v2820_v11 }
  0xf7   :  { %v231_v14 = vpop.f32.mrf.mxu0 }
  0xf8   :  { %312 = vst.msk [vmem:[#allocation2 + $0x8] sm:$0xff] %vm310_vm1, %v237_v13  ;;  %v232_v15 = vadd.f32 %v2820_v11, %v231_v14 }
  0xfa   :  { %311 = vst.msk [vmem:[#allocation2] sm:$0xff] %vm310_vm1, %v232_v15 }
  0xfb   :  { %v2318_v16 = vpop.f32.mrf.mxu1 }
  0xfd   :  { %v398_v20 = vpop.f32.mrf.mxu1 }
  0xff   :  { %v328_v17 = vld [vmem:[#allocation2 + $0x8] sm:$0xff] }
 0x100   :  { %v408_v18 = vadd.f32 %v2318_v16, %v328_v17 }
 0x101   :  { %v327_v19 = vld [vmem:[#allocation2] sm:$0xff]  ;;  %v2289_v24 = vpop.f32.mrf.mxu0 }
 0x102   :  { %2534 = vtanh.f32 %v408_v18  ;;  %v407_v21 = vadd.f32 %v398_v20, %v327_v19  ;;  %v247_v25 = vadd.f32 %v2289_v24, %v2820_v11 }
 0x103   :  { %v241_v26 = vpop.f32.mrf.mxu0 }
 0x104   :  { %2536 = vtanh.f32 %v407_v21  ;;  %314 = vst.msk [vmem:[#allocation2 + $0x18] sm:$0xff] %vm310_vm1, %v247_v25  ;;  %v242_v27 = vadd.f32 %v2820_v11, %v241_v26 }
 0x105   :  { %v2292_v38 = vpop.f32.mrf.mxu0 }
 0x106   :  { %313 = vst.msk [vmem:[#allocation2 + $0x10] sm:$0xff] %vm310_vm1, %v242_v27  ;;  %v257_v39 = vadd.f32 %v2292_v38, %v2820_v11 }
 0x107   :  { %v251_v40 = vpop.f32.mrf.mxu0 }
 0x108   :  { %316 = vst.msk [vmem:[#allocation2 + $0x28] sm:$0xff] %vm310_vm1, %v257_v39  ;;  %v252_v41 = vadd.f32 %v2820_v11, %v251_v40 }
 0x109   :  { %v2295_v52 = vpop.f32.mrf.mxu0 }
 0x10a   :  { %315 = vst.msk [vmem:[#allocation2 + $0x20] sm:$0xff] %vm310_vm1, %v252_v41  ;;  %v267_v53 = vadd.f32 %v2295_v52, %v2820_v11 }
 0x10b   :  { %v415_v30 = vld [vmem:[#allocation2 + $0x18] sm:$0xff]  ;;  %v261_v54 = vpop.f32.mrf.mxu0 }
 0x10c   :  { %318 = vst.msk [vmem:[#allocation2 + $0x38] sm:$0xff] %vm310_vm1, %v267_v53  ;;  %v262_v55 = vadd.f32 %v2820_v11, %v261_v54 }
 0x10d   :  { %v414_v33 = vld [vmem:[#allocation2 + $0x10] sm:$0xff]  ;;  %v2298_v14 = vpop.f32.mrf.mxu0 }
 0x10e   :  { %317 = vst.msk [vmem:[#allocation2 + $0x30] sm:$0xff] %vm310_vm1, %v262_v55  ;;  %v277_v15 = vadd.f32 %v2298_v14, %v2820_v11 }
 0x10f   :  { %v2535_v22 = vpop.eup %2534  ;;  %v505_v44 = vld [vmem:[#allocation2 + $0x28] sm:$0xff]  ;;  %v271_v16 = vpop.f32.mrf.mxu0 }
 0x110   :  { %412 = vst.msk [vmem:[#allocation2 + $0x8] sm:$0xff] %vm310_vm1, %v2535_v22  ;;  %320 = vst.msk [vmem:[#allocation2 + $0x48] sm:$0xff] %vm310_vm1, %v277_v15  ;;  %v272_v17 = vadd.f32 %v2820_v11, %v271_v16 }
 0x111   :  { %v2537_v23 = vpop.eup %2536  ;;  %v504_v47 = vld [vmem:[#allocation2 + $0x20] sm:$0xff]  ;;  %v2301_v18 = vpop.f32.mrf.mxu0 }
 0x112   :  { %411 = vst.msk [vmem:[#allocation2] sm:$0xff] %vm310_vm1, %v2537_v23  ;;  %2327 = vmatprep.mubr.msk.f32.mxu1 %vm310_vm1, %v2537_v23  ;;  %319 = vst.msk [vmem:[#allocation2 + $0x40] sm:$0xff] %vm310_vm1, %v272_v17  ;;  %v287_v19 = vadd.f32 %v2301_v18, %v2820_v11 }
 0x113   :  { %2328 = vmatmul.mubr.msk.f32.vlgmr.msra.gmra.mxu1 %vm310_vm1, %v2535_v22  ;;  %v595_v1 = vld [vmem:[#allocation2 + $0x38] sm:$0xff]  ;;  %v281_v20 = vpop.f32.mrf.mxu0 }
 0x114   :  { %2331 = vmatpush3.msra.mxu1 %v2770_v4  ;;  %322 = vst.msk [vmem:[#allocation2 + $0x58] sm:$0xff] %vm310_vm1, %v287_v19  ;;  %v282_v21 = vadd.f32 %v2820_v11, %v281_v20 }
 0x115   :  { %2332 = vmatprep.subr.mxu1 %v2775_v5  ;;  %v594_v6 = vld [vmem:[#allocation2 + $0x30] sm:$0xff]  ;;  %v2304_v22 = vpop.f32.mrf.mxu0 }
 0x116   :  { %2333 = vmatpush3.msra.mxu1 %v2775_v5  ;;  %321 = vst.msk [vmem:[#allocation2 + $0x50] sm:$0xff] %vm310_vm1, %v282_v21  ;;  %v297_v23 = vadd.f32 %v2304_v22, %v2820_v11 }
 0x117   :  { %2334 = vmatprep.subr.mxu1 %v2782_v7  ;;  %v291_v24 = vpop.f32.mrf.mxu0 }
 0x118   :  { %2335 = vmatpush3.msra.mxu1 %v2782_v7  ;;  %324 = vst.msk [vmem:[#allocation2 + $0x68] sm:$0xff] %vm310_vm1, %v297_v23  ;;  %v292_v25 = vadd.f32 %v2820_v11, %v291_v24 }
 0x119   :  { %2336 = vmatprep.subr.mxu1 %v2790_v8  ;;  %v2307_v26 = vpop.f32.mrf.mxu0 }
 0x11a   :  { %2337 = vmatpush3.msra.mxu1 %v2790_v8  ;;  %323 = vst.msk [vmem:[#allocation2 + $0x60] sm:$0xff] %vm310_vm1, %v292_v25  ;;  %v307_v27 = vadd.f32 %v2307_v26, %v2820_v11 }
 0x11b   :  { %2341 = vmatprep.subr.mxu1 %v2770_v4  ;;  %v301_v28 = vpop.f32.mrf.mxu0  ;;  %v775_v38 = vld [vmem:[#allocation2 + $0x58] sm:$0xff] }
 0x11c   :  { %326 = vst.msk [vmem:[#allocation2 + $0x78] sm:$0xff] %vm310_vm1, %v307_v27  ;;  %v302_v29 = vadd.f32 %v2820_v11, %v301_v28  ;;  %v1046_v11 = vld [vmem:[#allocation7 + $0x18] sm:$0xff] }
 0x11d   :  { %v774_v41 = vld [vmem:[#allocation2 + $0x50] sm:$0xff] }
 0x11e   :  { %325 = vst.msk [vmem:[#allocation2 + $0x70] sm:$0xff] %vm310_vm1, %v302_v29 }
 0x11f   :  { %v865_v61 = vld [vmem:[#allocation2 + $0x68] sm:$0xff] }
 0x1d3   :  { %v2329_v31 = vpop.f32.mrf.mxu1 }
 0x1d4   :  { %v498_v32 = vadd.f32 %v2329_v31, %v415_v30  ;;  %v685_v30 = vld [vmem:[#allocation2 + $0x48] sm:$0xff] }
 0x1d5   :  { %v488_v34 = vpop.f32.mrf.mxu1 }
 0x1d6   :  { %2538 = vtanh.f32 %v498_v32  ;;  %v497_v35 = vadd.f32 %v488_v34, %v414_v33  ;;  %v684_v33 = vld [vmem:[#allocation2 + $0x40] sm:$0xff] }
 0x1d8   :  { %2540 = vtanh.f32 %v497_v35 }
 0x1e3   :  { %v2539_v36 = vpop.eup %2538 }
 0x1e4   :  { %502 = vst.msk [vmem:[#allocation2 + $0x18] sm:$0xff] %vm310_vm1, %v2539_v36 }
 0x1e5   :  { %v2541_v37 = vpop.eup %2540 }
 0x1e6   :  { %501 = vst.msk [vmem:[#allocation2 + $0x10] sm:$0xff] %vm310_vm1, %v2541_v37  ;;  %2338 = vmatprep.mubr.msk.f32.mxu1 %vm310_vm1, %v2541_v37 }
 0x1e7   :  { %2339 = vmatmul.mubr.msk.f32.vlgmr.msra.gmra.mxu1 %vm310_vm1, %v2539_v36 }
 0x1e8   :  { %2342 = vmatpush3.msra.mxu1 %v2770_v4 }
 0x1e9   :  { %2343 = vmatprep.subr.mxu1 %v2775_v5 }
 0x1ea   :  { %2344 = vmatpush3.msra.mxu1 %v2775_v5 }
 0x1eb   :  { %2345 = vmatprep.subr.mxu1 %v2782_v7 }
 0x1ec   :  { %2346 = vmatpush3.msra.mxu1 %v2782_v7 }
 0x1ed   :  { %2347 = vmatprep.subr.mxu1 %v2790_v8 }
 0x1ee   :  { %2348 = vmatpush3.msra.mxu1 %v2790_v8 }
 0x1ef   :  { %2363 = vmatprep.subr.mxu1 %v2770_v4 }
 0x2a7   :  { %v2340_v45 = vpop.f32.mrf.mxu1 }
 0x2a8   :  { %v588_v46 = vadd.f32 %v2340_v45, %v505_v44  ;;  %v1044_v44 = vld [vmem:[#allocation7 + $0x8] sm:$0xff]  ;;  %v1043_v45 = vld [vmem:[#allocation7] sm:$0xff] }
 0x2a9   :  { %v578_v48 = vpop.f32.mrf.mxu1 }
 0x2aa   :  { %2542 = vtanh.f32 %v588_v46  ;;  %v587_v49 = vadd.f32 %v578_v48, %v504_v47  ;;  %v1053_v46 = vld [vmem:[#allocation2 + $0x8] sm:$0xff]  ;;  %v1054_v47 = vld [vmem:[#allocation2 + $0x10] sm:$0xff]  ;;  %v1055_v48 = vld [vmem:[#allocation2 + $0x18] sm:$0xff] }
 0x2ac   :  { %2544 = vtanh.f32 %v587_v49 }
 0x2b7   :  { %v2543_v50 = vpop.eup %2542 }
 0x2b8   :  { %592 = vst.msk [vmem:[#allocation2 + $0x28] sm:$0xff] %vm310_vm1, %v2543_v50 }
 0x2b9   :  { %v2545_v51 = vpop.eup %2544 }
 0x2ba   :  { %591 = vst.msk [vmem:[#allocation2 + $0x20] sm:$0xff] %vm310_vm1, %v2545_v51  ;;  %2349 = vmatprep.mubr.msk.f32.mxu1 %vm310_vm1, %v2545_v51 }
 0x2bb   :  { %2350 = vmatmul.mubr.msk.f32.vlgmr.msra.gmra.mxu1 %vm310_vm1, %v2543_v50 }
 0x2bc   :  { %2364 = vmatpush3.msra.mxu1 %v2770_v4 }
 0x2bd   :  { %2365 = vmatprep.subr.mxu1 %v2775_v5 }
 0x2be   :  { %2366 = vmatpush3.msra.mxu1 %v2775_v5 }
 0x2bf   :  { %2367 = vmatprep.subr.mxu1 %v2782_v7  ;;  %v1057_v50 = vld [vmem:[#allocation2 + $0x28] sm:$0xff] }
 0x2c0   :  { %2368 = vmatpush3.msra.mxu1 %v2782_v7 }
 0x2c1   :  { %2369 = vmatprep.subr.mxu1 %v2790_v8  ;;  %v1056_v49 = vld [vmem:[#allocation2 + $0x20] sm:$0xff] }
 0x2c2   :  { %2370 = vmatpush3.msra.mxu1 %v2790_v8 }
 0x2c3   :  { %2385 = vmatprep.subr.mxu1 %v2770_v4 }
 0x37b   :  { %v2351_v2 = vpop.f32.mrf.mxu1 }
 0x37c   :  { %v678_v3 = vadd.f32 %v2351_v2, %v595_v1  ;;  %v864_v1 = vld [vmem:[#allocation2 + $0x60] sm:$0xff] }
 0x37d   :  { %v668_v9 = vpop.f32.mrf.mxu1 }
 0x37e   :  { %2546 = vtanh.f32 %v678_v3  ;;  %v677_v10 = vadd.f32 %v668_v9, %v594_v6  ;;  %v2961_v6 = vld [vmem:[%s3104_s6] ss:$0 sm:$0xff] }
 0x380   :  { %2548 = vtanh.f32 %v677_v10 }
 0x38b   :  { %v2547_v12 = vpop.eup %2546 }
 0x38c   :  { %682 = vst.msk [vmem:[#allocation2 + $0x38] sm:$0xff] %vm310_vm1, %v2547_v12 }
 0x38d   :  { %v2549_v13 = vpop.eup %2548 }
 0x38e   :  { %681 = vst.msk [vmem:[#allocation2 + $0x30] sm:$0xff] %vm310_vm1, %v2549_v13  ;;  %2360 = vmatprep.mubr.msk.f32.mxu0 %vm310_vm1, %v2549_v13 }
 0x38f   :  { %2361 = vmatmul.mubr.msk.f32.vlgmr.msra.gmra.mxu0 %vm310_vm1, %v2547_v12 }
 0x390   :  { %2375 = vmatpush3.msra.mxu0 %v2770_v4 }
 0x391   :  { %2376 = vmatprep.subr.mxu0 %v2775_v5 }
 0x392   :  { %2377 = vmatpush3.msra.mxu0 %v2775_v5 }
 0x393   :  { %2378 = vmatprep.subr.mxu0 %v2782_v7  ;;  %v1059_v52 = vld [vmem:[#allocation2 + $0x38] sm:$0xff] }
 0x394   :  { %2379 = vmatpush3.msra.mxu0 %v2782_v7 }
 0x395   :  { %2380 = vmatprep.subr.mxu0 %v2790_v8  ;;  %v1058_v51 = vld [vmem:[#allocation2 + $0x30] sm:$0xff] }
 0x396   :  { %2381 = vmatpush3.msra.mxu0 %v2790_v8 }
 0x397   :  { %2396 = vmatprep.subr.mxu0 %v1046_v11 }
 0x44f   :  { %v2362_v31 = vpop.f32.mrf.mxu0 }
 0x450   :  { %v768_v32 = vadd.f32 %v2362_v31, %v685_v30 }
 0x451   :  { %v758_v34 = vpop.f32.mrf.mxu0 }
 0x452   :  { %2550 = vtanh.f32 %v768_v32  ;;  %v767_v35 = vadd.f32 %v758_v34, %v684_v33 }
 0x454   :  { %2552 = vtanh.f32 %v767_v35 }
 0x45f   :  { %v2551_v36 = vpop.eup %2550 }
 0x460   :  { %772 = vst.msk [vmem:[#allocation2 + $0x48] sm:$0xff] %vm310_vm1, %v2551_v36 }
 0x461   :  { %v2553_v37 = vpop.eup %2552 }
 0x462   :  { %771 = vst.msk [vmem:[#allocation2 + $0x40] sm:$0xff] %vm310_vm1, %v2553_v37  ;;  %2371 = vmatprep.mubr.msk.f32.mxu1 %vm310_vm1, %v2553_v37 }
 0x463   :  { %2372 = vmatmul.mubr.msk.f32.vlgmr.msra.gmra.mxu1 %vm310_vm1, %v2551_v36 }
 0x464   :  { %2386 = vmatpush3.msra.mxu1 %v2770_v4 }
 0x465   :  { %2387 = vmatprep.subr.mxu1 %v2775_v5 }
 0x466   :  { %2388 = vmatpush3.msra.mxu1 %v2775_v5 }
 0x467   :  { %2389 = vmatprep.subr.mxu1 %v2782_v7  ;;  %v1061_v54 = vld [vmem:[#allocation2 + $0x48] sm:$0xff] }
 0x468   :  { %2390 = vmatpush3.msra.mxu1 %v2782_v7  ;;  %v1045_v7 = vld [vmem:[#allocation7 + $0x10] sm:$0xff] }
 0x469   :  { %2391 = vmatprep.subr.mxu1 %v2790_v8  ;;  %v1060_v53 = vld [vmem:[#allocation2 + $0x40] sm:$0xff] }
 0x46a   :  { %2392 = vmatpush3.msra.mxu1 %v2790_v8  ;;  %v1052_v8 = vld [vmem:[#allocation2] sm:$0xff] }
 0x46b   :  { %2428 = vmatprep.subr.mxu1 %v2940_v57 }
 0x523   :  { %v2373_v39 = vpop.f32.mrf.mxu1 }
 0x524   :  { %v858_v40 = vadd.f32 %v2373_v39, %v775_v38  ;;  %v954_v39 = vld [vmem:[#allocation2 + $0x70] sm:$0xff] }
 0x525   :  { %v848_v42 = vpop.f32.mrf.mxu1 }
 0x526   :  { %2554 = vtanh.f32 %v858_v40  ;;  %v857_v4 = vadd.f32 %v848_v42, %v774_v41 }
 0x528   :  { %2556 = vtanh.f32 %v857_v4 }
 0x533   :  { %v2555_v43 = vpop.eup %2554 }
 0x534   :  { %862 = vst.msk [vmem:[#allocation2 + $0x58] sm:$0xff] %vm310_vm1, %v2555_v43 }
 0x535   :  { %v2557_v5 = vpop.eup %2556 }
 0x536   :  { %861 = vst.msk [vmem:[#allocation2 + $0x50] sm:$0xff] %vm310_vm1, %v2557_v5  ;;  %2382 = vmatprep.mubr.msk.f32.mxu0 %vm310_vm1, %v2557_v5 }
 0x537   :  { %2383 = vmatmul.mubr.msk.f32.vlgmr.msra.gmra.mxu0 %vm310_vm1, %v2555_v43 }
 0x538   :  { %2397 = vmatpush3.msra.mxu0 %v1046_v11  ;;  %2404 = vmatprep.mubr.msk.f32.mxu0 %vm310_vm1, %v1052_v8 }
 0x539   :  { %2398 = vmatprep.subr.mxu0 %v1045_v7 }
 0x53a   :  { %2399 = vmatpush3.msra.mxu0 %v1045_v7 }
 0x53b   :  { %2400 = vmatprep.subr.mxu0 %v1044_v44  ;;  %v1063_v56 = vld [vmem:[#allocation2 + $0x58] sm:$0xff] }
 0x53c   :  { %2401 = vmatpush3.msra.mxu0 %v1044_v44 }
 0x53d   :  { %2402 = vmatprep.subr.mxu0 %v1043_v45  ;;  %v1062_v55 = vld [vmem:[#allocation2 + $0x50] sm:$0xff] }
 0x53e   :  { %2403 = vmatpush3.msra.mxu0 %v1043_v45 }
 0x53f   :  { %2405 = vmatmul.mubr.msk.f32.vlgmr.msra.gmra.mxu0 %vm310_vm1, %v1053_v46  ;;  %2472 = vmatprep.subr.mxu0 %v2940_v57 }
 0x540   :  { %2407 = vmatprep.mubr.msk.f32.mxu0 %vm310_vm1, %v1054_v47  ;;  %2473 = vmatpush3.msra.mxu0 %v2940_v57 }
 0x541   :  { %2474 = vmatprep.subr.mxu0 %v2944_v58 }
 0x542   :  { %2475 = vmatpush3.msra.mxu0 %v2944_v58 }
 0x543   :  { %2408 = vmatmul.mubr.msk.f32.gmra.mxu0 %vm310_vm1, %v1055_v48  ;;  %2476 = vmatprep.subr.mxu0 %v2948_v59 }
 0x544   :  { %2410 = vmatprep.mubr.msk.f32.mxu0 %vm310_vm1, %v1056_v49  ;;  %2477 = vmatpush3.msra.mxu0 %v2948_v59 }
 0x545   :  { %2478 = vmatprep.subr.mxu0 %v2952_v60 }
 0x546   :  { %2479 = vmatpush3.msra.mxu0 %v2952_v60 }
 0x547   :  { %2411 = vmatmul.mubr.msk.f32.gmra.mxu0 %vm310_vm1, %v1057_v50  ;;  %2494 = vmatprep.subr.mxu0 %v2940_v57 }
 0x548   :  { %2413 = vmatprep.mubr.msk.f32.mxu0 %vm310_vm1, %v1058_v51 }
 0x54b   :  { %2414 = vmatmul.mubr.msk.f32.gmra.mxu0 %vm310_vm1, %v1059_v52 }
 0x54c   :  { %2416 = vmatprep.mubr.msk.f32.mxu0 %vm310_vm1, %v1060_v53 }
 0x54f   :  { %2417 = vmatmul.mubr.msk.f32.gmra.mxu0 %vm310_vm1, %v1061_v54 }
 0x550   :  { %2419 = vmatprep.mubr.msk.f32.mxu0 %vm310_vm1, %v1062_v55 }
 0x553   :  { %2420 = vmatmul.mubr.msk.f32.gmra.mxu0 %vm310_vm1, %v1063_v56 }
 0x5f7   :  { %v2384_v62 = vpop.f32.mrf.mxu0 }
 0x5f8   :  { %v948_v63 = vadd.f32 %v2384_v62, %v865_v61 }
 0x5f9   :  { %v938_v2 = vpop.f32.mrf.mxu0 }
 0x5fa   :  { %2558 = vtanh.f32 %v948_v63  ;;  %v947_v3 = vadd.f32 %v938_v2, %v864_v1 }
 0x5fc   :  { %2560 = vtanh.f32 %v947_v3 }
 0x5ff   :  { %v2406_v9 = vpop.f32.mrf.mxu0 }
 0x600   :  { %v1194_v10 = vadd.f32 %v2406_v9, %v2961_v6 }
 0x601   :  { %v1188_v12 = vpop.f32.mrf.mxu0 }
 0x602   :  { %1268 = vst.msk [vmem:[#allocation2 + $0x8] sm:$0xff] %vm310_vm1, %v1194_v10  ;;  %v1189_v13 = vadd.f32 %v2961_v6, %v1188_v12 }
 0x603   :  { %v2409_v14 = vpop.f32.mrf.mxu0 }
 0x604   :  { %1267 = vst.msk [vmem:[#allocation2] sm:$0xff] %vm310_vm1, %v1189_v13  ;;  %v1204_v15 = vadd.f32 %v2409_v14, %v2961_v6 }
 0x605   :  { %v1198_v16 = vpop.f32.mrf.mxu0 }
 0x606   :  { %1270 = vst.msk [vmem:[#allocation2 + $0x18] sm:$0xff] %vm310_vm1, %v1204_v15  ;;  %v1199_v17 = vadd.f32 %v2961_v6, %v1198_v16 }
 0x607   :  { %v2559_v18 = vpop.eup %2558  ;;  %v2412_v19 = vpop.f32.mrf.mxu0 }
 0x608   :  { %952 = vst.msk [vmem:[#allocation2 + $0x68] sm:$0xff] %vm310_vm1, %v2559_v18  ;;  %1269 = vst.msk [vmem:[#allocation2 + $0x10] sm:$0xff] %vm310_vm1, %v1199_v17  ;;  %v1214_v20 = vadd.f32 %v2412_v19, %v2961_v6 }
 0x609   :  { %v2561_v21 = vpop.eup %2560  ;;  %v1208_v22 = vpop.f32.mrf.mxu0  ;;  %v1284_v43 = vld [vmem:[#allocation2 + $0x8] sm:$0xff] }
 0x60a   :  { %951 = vst.msk [vmem:[#allocation2 + $0x60] sm:$0xff] %vm310_vm1, %v2561_v21  ;;  %1272 = vst.msk [vmem:[#allocation2 + $0x28] sm:$0xff] %vm310_vm1, %v1214_v20  ;;  %v1209_v23 = vadd.f32 %v2961_v6, %v1208_v22  ;;  %2393 = vmatprep.mubr.msk.f32.mxu1 %vm310_vm1, %v2561_v21 }
 0x60b   :  { %v2415_v24 = vpop.f32.mrf.mxu0  ;;  %2394 = vmatmul.mubr.msk.f32.vlgmr.msra.gmra.mxu1 %vm310_vm1, %v2559_v18  ;;  %v1283_v8 = vld [vmem:[#allocation2] sm:$0xff] }
 0x60c   :  { %1271 = vst.msk [vmem:[#allocation2 + $0x20] sm:$0xff] %vm310_vm1, %v1209_v23  ;;  %v1224_v25 = vadd.f32 %v2415_v24, %v2961_v6  ;;  %2429 = vmatpush3.msra.mxu1 %v2940_v57  ;;  %2436 = vmatprep.mubr.f32.mxu1 %v2690_v0 }
 0x60d   :  { %v1218_v26 = vpop.f32.mrf.mxu0  ;;  %2430 = vmatprep.subr.mxu1 %v2944_v58  ;;  %v1365_v56 = vld [vmem:[#allocation2 + $0x18] sm:$0xff] }
 0x60e   :  { %1274 = vst.msk [vmem:[#allocation2 + $0x38] sm:$0xff] %vm310_vm1, %v1224_v25  ;;  %v1219_v27 = vadd.f32 %v2961_v6, %v1218_v26  ;;  %2431 = vmatpush3.msra.mxu1 %v2944_v58 }
 0x60f   :  { %v2418_v28 = vpop.f32.mrf.mxu0  ;;  %2432 = vmatprep.subr.mxu1 %v2948_v59  ;;  %v1065_v33 = vld [vmem:[#allocation2 + $0x68] sm:$0xff]  ;;  %v1364_v63 = vld [vmem:[#allocation2 + $0x10] sm:$0xff] }
 0x610   :  { %1273 = vst.msk [vmem:[#allocation2 + $0x30] sm:$0xff] %vm310_vm1, %v1219_v27  ;;  %v1234_v29 = vadd.f32 %v2418_v28, %v2961_v6  ;;  %2433 = vmatpush3.msra.mxu1 %v2948_v59 }
 0x611   :  { %v1228_v30 = vpop.f32.mrf.mxu0  ;;  %2434 = vmatprep.subr.mxu1 %v2952_v60  ;;  %v1064_v31 = vld [vmem:[#allocation2 + $0x60] sm:$0xff]  ;;  %v1452_v13 = vld [vmem:[#allocation2 + $0x28] sm:$0xff] }
 0x612   :  { %1276 = vst.msk [vmem:[#allocation2 + $0x48] sm:$0xff] %vm310_vm1, %v1234_v29  ;;  %v1229_v32 = vadd.f32 %v2961_v6, %v1228_v30  ;;  %2435 = vmatpush3.msra.mxu1 %v2952_v60  ;;  %2422 = vmatprep.mubr.msk.f32.mxu0 %vm310_vm1, %v1064_v31 }
 0x613   :  { %v2421_v34 = vpop.f32.mrf.mxu0  ;;  %2437 = vmatmul.mubr.f32.vlgmr.msra.gmra.mxu1 %v2690_v0  ;;  %2423 = vmatmul.mubr.msk.f32.gmra.mxu0 %vm310_vm1, %v1065_v33  ;;  %v955_v0 = vld [vmem:[#allocation2 + $0x78] sm:$0xff]  ;;  %v1451_v15 = vld [vmem:[#allocation2 + $0x20] sm:$0xff] }
 0x614   :  { %1275 = vst.msk [vmem:[#allocation2 + $0x40] sm:$0xff] %vm310_vm1, %v1229_v32  ;;  %v1244_v35 = vadd.f32 %v2421_v34, %v2961_v6  ;;  %2439 = vmatprep.subr.mxu1 %v2940_v57 }
 0x615   :  { %v1238_v36 = vpop.f32.mrf.mxu0  ;;  %2440 = vmatpush3.msra.mxu1 %v2940_v57  ;;  %v1539_v21 = vld [vmem:[#allocation2 + $0x38] sm:$0xff] }
 0x616   :  { %1278 = vst.msk [vmem:[#allocation2 + $0x58] sm:$0xff] %vm310_vm1, %v1244_v35  ;;  %v1239_v37 = vadd.f32 %v2961_v6, %v1238_v36  ;;  %2441 = vmatprep.subr.mxu1 %v2944_v58 }
 0x617   :  { %2442 = vmatpush3.msra.mxu1 %v2944_v58  ;;  %v1538_v23 = vld [vmem:[#allocation2 + $0x30] sm:$0xff] }
 0x618   :  { %1277 = vst.msk [vmem:[#allocation2 + $0x50] sm:$0xff] %vm310_vm1, %v1239_v37  ;;  %2443 = vmatprep.subr.mxu1 %v2948_v59 }
 0x619   :  { %2444 = vmatpush3.msra.mxu1 %v2948_v59  ;;  %v1626_v29 = vld [vmem:[#allocation2 + $0x48] sm:$0xff] }
 0x61a   :  { %2445 = vmatprep.subr.mxu1 %v2952_v60 }
 0x61b   :  { %2446 = vmatpush3.msra.mxu1 %v2952_v60  ;;  %v1625_v31 = vld [vmem:[#allocation2 + $0x40] sm:$0xff] }
 0x61c   :  { %2450 = vmatprep.subr.mxu1 %v2940_v57 }
 0x61d   :  { %v1713_v37 = vld [vmem:[#allocation2 + $0x58] sm:$0xff] }
 0x6cb   :  { %v2395_v11 = vpop.f32.mrf.mxu1 }
 0x6cc   :  { %v1038_v38 = vadd.f32 %v2395_v11, %v955_v0  ;;  %v1712_v11 = vld [vmem:[#allocation2 + $0x50] sm:$0xff] }
 0x6cd   :  { %v1028_v40 = vpop.f32.mrf.mxu1 }
 0x6ce   :  { %2562 = vtanh.f32 %v1038_v38  ;;  %v1037_v41 = vadd.f32 %v1028_v40, %v954_v39 }
 0x6d0   :  { %2564 = vtanh.f32 %v1037_v41 }
 0x6d3   :  { %v2438_v42 = vpop.f32.mrf.mxu1  ;;  %v2424_v4 = vpop.f32.mrf.mxu0 }
 0x6d4   :  { %v1254_v5 = vadd.f32 %v2424_v4, %v2961_v6  ;;  %v1361_v7 = vadd.f32 %v2438_v42, %v1284_v43 }
 0x6d5   :  { %v1351_v44 = vpop.f32.mrf.mxu1  ;;  %v1248_v45 = vpop.f32.mrf.mxu0 }
 0x6d6   :  { %1280 = vst.msk [vmem:[#allocation2 + $0x68] sm:$0xff] %vm310_vm1, %v1254_v5  ;;  %v1360_v46 = vadd.f32 %v1351_v44, %v1283_v8  ;;  %v1249_v47 = vadd.f32 %v2961_v6, %v1248_v45  ;;  %v1975_v8 = vld [vmem:[%s3105_s7 + $0x10] sm:$0xff]  ;;  %v1974_v44 = vld [vmem:[%s3105_s7 + $0x8] sm:$0xff]  ;;  %v1973_v45 = vld [vmem:[%s3105_s7] sm:$0xff] }
 0x6d8   :  { %2566 = vtanh.f32 %v1360_v46  ;;  %1279 = vst.msk [vmem:[#allocation2 + $0x60] sm:$0xff] %vm310_vm1, %v1249_v47 }
 0x6d9   :  { %2568 = vtanh.f32 %v1361_v7  ;;  %v1976_v7 = vld [vmem:[%s3105_s7 + $0x18] sm:$0xff] }
 0x6db   :  { %v2563_v48 = vpop.eup %2562 }
 0x6dc   :  { %1042 = vst.msk [vmem:[#allocation2 + $0x78] sm:$0xff] %vm310_vm1, %v2563_v48 }
 0x6dd   :  { %v2565_v49 = vpop.eup %2564 }
 0x6de   :  { %1041 = vst.msk [vmem:[#allocation2 + $0x70] sm:$0xff] %vm310_vm1, %v2565_v49 }
 0x6df   :  { %v1799_v42 = vld [vmem:[#allocation2 + $0x60] sm:$0xff] }
 0x6e3   :  { %v1067_v53 = vld [vmem:[#allocation2 + $0x78] sm:$0xff] }
 0x6e5   :  { %v2567_v50 = vpop.eup %2566  ;;  %v1066_v51 = vld [vmem:[#allocation2 + $0x70] sm:$0xff] }
 0x6e6   :  { %v2569_v52 = vpop.eup %2568  ;;  %2447 = vmatprep.mubr.msk.f32.mxu1 %vm310_vm1, %v2567_v50  ;;  %2425 = vmatprep.mubr.msk.f32.mxu0 %vm310_vm1, %v1066_v51 }
 0x6e7   :  { %2448 = vmatmul.mubr.msk.f32.vlgmr.msra.gmra.mxu1 %vm310_vm1, %v2569_v52  ;;  %2426 = vmatmul.mubr.msk.f32.gmra.mxu0 %vm310_vm1, %v1067_v53 }
 0x6e8   :  { %2451 = vmatpush3.msra.mxu1 %v2940_v57 }
 0x6e9   :  { %2452 = vmatprep.subr.mxu1 %v2944_v58 }
 0x6ea   :  { %2453 = vmatpush3.msra.mxu1 %v2944_v58 }
 0x6eb   :  { %2454 = vmatprep.subr.mxu1 %v2948_v59 }
 0x6ec   :  { %2455 = vmatpush3.msra.mxu1 %v2948_v59 }
 0x6ed   :  { %2456 = vmatprep.subr.mxu1 %v2952_v60 }
 0x6ee   :  { %2457 = vmatpush3.msra.mxu1 %v2952_v60 }
 0x6ef   :  { %2461 = vmatprep.subr.mxu1 %v2940_v57 }
 0x7a7   :  { %v2449_v54 = vpop.f32.mrf.mxu1  ;;  %v2427_v55 = vpop.f32.mrf.mxu0 }
 0x7a8   :  { %v1264_v61 = vadd.f32 %v2427_v55, %v2961_v6  ;;  %v1448_v62 = vadd.f32 %v2449_v54, %v1365_v56  ;;  %v2137_v54 = vld [vmem:[%s3106_s8] ss:$0 sm:$0xff] }
 0x7a9   :  { %v1438_v1 = vpop.f32.mrf.mxu1  ;;  %v1258_v2 = vpop.f32.mrf.mxu0 }
 0x7aa   :  { %1282 = vst.msk [vmem:[#allocation2 + $0x78] sm:$0xff] %vm310_vm1, %v1264_v61  ;;  %v1447_v3 = vadd.f32 %v1438_v1, %v1364_v63  ;;  %v1259_v9 = vadd.f32 %v2961_v6, %v1258_v2 }
 0x7ac   :  { %2570 = vtanh.f32 %v1447_v3  ;;  %1281 = vst.msk [vmem:[#allocation2 + $0x70] sm:$0xff] %vm310_vm1, %v1259_v9 }
 0x7ad   :  { %2572 = vtanh.f32 %v1448_v62 }
 0x7b1   :  { %v1887_v47 = vld [vmem:[#allocation2 + $0x78] sm:$0xff] }
 0x7b3   :  { %v1886_v49 = vld [vmem:[#allocation2 + $0x70] sm:$0xff] }
 0x7b9   :  { %v2571_v10 = vpop.eup %2570 }
 0x7ba   :  { %v2573_v12 = vpop.eup %2572  ;;  %2458 = vmatprep.mubr.msk.f32.mxu1 %vm310_vm1, %v2571_v10 }
 0x7bb   :  { %2459 = vmatmul.mubr.msk.f32.vlgmr.msra.gmra.mxu1 %vm310_vm1, %v2573_v12 }
 0x7bc   :  { %2462 = vmatpush3.msra.mxu1 %v2940_v57 }
 0x7bd   :  { %2463 = vmatprep.subr.mxu1 %v2944_v58 }
 0x7be   :  { %2464 = vmatpush3.msra.mxu1 %v2944_v58 }
 0x7bf   :  { %2465 = vmatprep.subr.mxu1 %v2948_v59 }
 0x7c0   :  { %2466 = vmatpush3.msra.mxu1 %v2948_v59 }
 0x7c1   :  { %2467 = vmatprep.subr.mxu1 %v2952_v60 }
 0x7c2   :  { %2468 = vmatpush3.msra.mxu1 %v2952_v60 }
 0x7c3   :  { %2483 = vmatprep.subr.mxu1 %v2940_v57 }
 0x87b   :  { %v2460_v6 = vpop.f32.mrf.mxu1 }
 0x87c   :  { %v1535_v14 = vadd.f32 %v2460_v6, %v1452_v13 }
 0x87d   :  { %v1525_v16 = vpop.f32.mrf.mxu1 }
 0x87e   :  { %v1534_v17 = vadd.f32 %v1525_v16, %v1451_v15 }
 0x880   :  { %2574 = vtanh.f32 %v1534_v17 }
 0x881   :  { %2576 = vtanh.f32 %v1535_v14 }
 0x88d   :  { %v2575_v18 = vpop.eup %2574 }
 0x88e   :  { %v2577_v19 = vpop.eup %2576  ;;  %2469 = vmatprep.mubr.msk.f32.mxu1 %vm310_vm1, %v2575_v18 }
 0x88f   :  { %2470 = vmatmul.mubr.msk.f32.vlgmr.msra.gmra.mxu1 %vm310_vm1, %v2577_v19 }
 0x890   :  { %2484 = vmatpush3.msra.mxu1 %v2940_v57 }
 0x891   :  { %2485 = vmatprep.subr.mxu1 %v2944_v58 }
 0x892   :  { %2486 = vmatpush3.msra.mxu1 %v2944_v58 }
 0x893   :  { %2487 = vmatprep.subr.mxu1 %v2948_v59 }
 0x894   :  { %2488 = vmatpush3.msra.mxu1 %v2948_v59 }
 0x895   :  { %2489 = vmatprep.subr.mxu1 %v2952_v60 }
 0x896   :  { %2490 = vmatpush3.msra.mxu1 %v2952_v60 }
 0x897   :  { %2505 = vmatprep.subr.mxu1 %v2940_v57 }
 0x94f   :  { %v2471_v20 = vpop.f32.mrf.mxu1 }
 0x950   :  { %v1622_v22 = vadd.f32 %v2471_v20, %v1539_v21 }
 0x951   :  { %v1612_v24 = vpop.f32.mrf.mxu1 }
 0x952   :  { %v1621_v25 = vadd.f32 %v1612_v24, %v1538_v23 }
 0x954   :  { %2578 = vtanh.f32 %v1621_v25 }
 0x955   :  { %2580 = vtanh.f32 %v1622_v22 }
 0x961   :  { %v2579_v26 = vpop.eup %2578 }
 0x962   :  { %v2581_v27 = vpop.eup %2580  ;;  %2480 = vmatprep.mubr.msk.f32.mxu0 %vm310_vm1, %v2579_v26 }
 0x963   :  { %2481 = vmatmul.mubr.msk.f32.vlgmr.msra.gmra.mxu0 %vm310_vm1, %v2581_v27 }
 0x964   :  { %2495 = vmatpush3.msra.mxu0 %v2940_v57 }
 0x965   :  { %2496 = vmatprep.subr.mxu0 %v2944_v58 }
 0x966   :  { %2497 = vmatpush3.msra.mxu0 %v2944_v58 }
 0x967   :  { %2498 = vmatprep.subr.mxu0 %v2948_v59 }
 0x968   :  { %2499 = vmatpush3.msra.mxu0 %v2948_v59 }
 0x969   :  { %2500 = vmatprep.subr.mxu0 %v2952_v60 }
 0x96a   :  { %2501 = vmatpush3.msra.mxu0 %v2952_v60 }
 0x96b   :  { %2516 = vmatprep.subr.mxu0 %v1976_v7 }
 0xa23   :  { %v2482_v28 = vpop.f32.mrf.mxu0 }
 0xa24   :  { %v1709_v30 = vadd.f32 %v2482_v28, %v1626_v29 }
 0xa25   :  { %v1699_v32 = vpop.f32.mrf.mxu0 }
 0xa26   :  { %v1708_v33 = vadd.f32 %v1699_v32, %v1625_v31 }
 0xa28   :  { %2582 = vtanh.f32 %v1708_v33 }
 0xa29   :  { %2584 = vtanh.f32 %v1709_v30 }
 0xa35   :  { %v2583_v34 = vpop.eup %2582 }
 0xa36   :  { %v2585_v35 = vpop.eup %2584  ;;  %2491 = vmatprep.mubr.msk.f32.mxu1 %vm310_vm1, %v2583_v34 }
 0xa37   :  { %2492 = vmatmul.mubr.msk.f32.vlgmr.msra.gmra.mxu1 %vm310_vm1, %v2585_v35 }
 0xa38   :  { %2506 = vmatpush3.msra.mxu1 %v2940_v57 }
 0xa39   :  { %2507 = vmatprep.subr.mxu1 %v2944_v58 }
 0xa3a   :  { %2508 = vmatpush3.msra.mxu1 %v2944_v58 }
 0xa3b   :  { %2509 = vmatprep.subr.mxu1 %v2948_v59 }
 0xa3c   :  { %2510 = vmatpush3.msra.mxu1 %v2948_v59  ;;  %v1800_v59 = vld [vmem:[#allocation2 + $0x68] sm:$0xff] }
 0xa3d   :  { %2511 = vmatprep.subr.mxu1 %v2952_v60 }
 0xa3e   :  { %2512 = vmatpush3.msra.mxu1 %v2952_v60 }
 0xaf7   :  { %v2493_v36 = vpop.f32.mrf.mxu1 }
 0xaf8   :  { %v1796_v0 = vadd.f32 %v2493_v36, %v1713_v37 }
 0xaf9   :  { %v1786_v38 = vpop.f32.mrf.mxu1 }
 0xafa   :  { %v1795_v39 = vadd.f32 %v1786_v38, %v1712_v11 }
 0xafc   :  { %2586 = vtanh.f32 %v1795_v39 }
 0xafd   :  { %2588 = vtanh.f32 %v1796_v0 }
 0xb09   :  { %v2587_v57 = vpop.eup %2586 }
 0xb0a   :  { %v2589_v40 = vpop.eup %2588  ;;  %2502 = vmatprep.mubr.msk.f32.mxu0 %vm310_vm1, %v2587_v57 }
 0xb0b   :  { %2503 = vmatmul.mubr.msk.f32.vlgmr.msra.gmra.mxu0 %vm310_vm1, %v2589_v40 }
 0xb0c   :  { %2517 = vmatpush3.msra.mxu0 %v1976_v7 }
 0xb0d   :  { %2518 = vmatprep.subr.mxu0 %v1975_v8 }
 0xb0e   :  { %2519 = vmatpush3.msra.mxu0 %v1975_v8 }
 0xb0f   :  { %2520 = vmatprep.subr.mxu0 %v1974_v44 }
 0xb10   :  { %2521 = vmatpush3.msra.mxu0 %v1974_v44 }
 0xb11   :  { %2522 = vmatprep.subr.mxu0 %v1973_v45 }
 0xb12   :  { %2523 = vmatpush3.msra.mxu0 %v1973_v45 }
 0xbcb   :  { %v2504_v58 = vpop.f32.mrf.mxu0 }
 0xbcc   :  { %v1883_v41 = vadd.f32 %v2504_v58, %v1800_v59 }
 0xbcd   :  { %v1873_v4 = vpop.f32.mrf.mxu0 }
 0xbce   :  { %v1882_v60 = vadd.f32 %v1873_v4, %v1799_v42 }
 0xbd0   :  { %2590 = vtanh.f32 %v1882_v60 }
 0xbd1   :  { %2592 = vtanh.f32 %v1883_v41 }
 0xbdd   :  { %v2591_v43 = vpop.eup %2590 }
 0xbde   :  { %v2593_v5 = vpop.eup %2592  ;;  %2513 = vmatprep.mubr.msk.f32.mxu1 %vm310_vm1, %v2591_v43 }
 0xbdf   :  { %2514 = vmatmul.mubr.msk.f32.vlgmr.msra.gmra.mxu1 %vm310_vm1, %v2593_v5 }
 0xc9f   :  { %v2515_v46 = vpop.f32.mrf.mxu1 }
 0xca0   :  { %v1970_v48 = vadd.f32 %v2515_v46, %v1887_v47 }
 0xca1   :  { %v1960_v50 = vpop.f32.mrf.mxu1 }
 0xca2   :  { %v1969_v51 = vadd.f32 %v1960_v50, %v1886_v49 }
 0xca4   :  { %2594 = vtanh.f32 %v1969_v51 }
 0xca5   :  { %2596 = vtanh.f32 %v1970_v48 }
 0xcb1   :  { %v2595_v52 = vpop.eup %2594 }
 0xcb2   :  { %v2597_v53 = vpop.eup %2596  ;;  %2524 = vmatprep.mubr.msk.f32.mxu0 %vm310_vm1, %v2595_v52 }
 0xcb3   :  { %2525 = vmatmul.mubr.msk.f32.vlgmr.msra.gmra.mxu0 %vm310_vm1, %v2597_v53 }
 0xd73   :  { %v2526_v55 = vpop.f32.mrf.mxu0 }
 0xd74   :  { %v2062_v56 = vadd.f32 %v2526_v55, %v2137_v54 }
 0xd75   :  { %v2056_v61 = vpop.f32.mrf.mxu0 }
 0xd76   :  { %2067 = vst.msk [vmem:[%s3107_s9 + $0x8] sm:$0xff] %vm2065_vm2, %v2062_v56  ;;  %v2057_v62 = vadd.f32 %v2137_v54, %v2056_v61 }
 0xd78   :  { %2066 = vst.msk [vmem:[%s3107_s9] sm:$0xff] %vm2065_vm2, %v2057_v62 }
 0xd79   :  { %2072 = vsyncpa [#allocation4], 1 }
 0xd7a   :  { %2073 = vsyncpa [#allocation6], 1 }
 0xd7b   :  { %2074 = vsyncpa [#allocation9], 1 }

</bundles_post_ra>
